<compile_context>
chip_gen: v6e
topology: v6e:2x2x1
jax: 0.10.0
libtpu: 0.0.40
codegen_flags: <defaults>
</compile_context>

<pallas_src>
import functools
import math

import jax
import jax.numpy as jnp
from jax.experimental import pallas as pl
from jax.experimental.pallas import tpu as pltpu


def _layernorm(x, gamma, beta, eps=1e-5):
    # PyTorch nn.LayerNorm: biased variance, eps=1e-5, f32 statistics.
    mean = jnp.mean(x, axis=-1, keepdims=True)
    var = jnp.mean((x - mean) ** 2, axis=-1, keepdims=True)
    return (x - mean) * jax.lax.rsqrt(var + eps) * gamma + beta


def decoder_stack_kernel(head_num, d_k, seq_len, batch_block,
                         x_ref,
                         ln1_g, ln1_b, wq_ref, wk_ref, wv_ref, wo_ref,
                         ln2_g, ln2_b, w1_ref, b1_ref, w2_ref, b2_ref,
                         o_ref):
    H, S, Bt = head_num, seq_len, batch_block
    D = H * d_k
    M = Bt * S                               # rows folded into the matmul M-dim
    l = pl.program_id(1)

    # First layer of each batch block: bring the activation into the resident
    # output block.  It stays in VMEM across the whole ("arbitrary") layer axis.
    @pl.when(l == 0)
    def _():
        o_ref[...] = x_ref[...]

    x = o_ref[...]                           # (M, D) f32, resident activation

    # ---- addnorm1: reference REPLACES x with LN(x); residual uses LN(x) ----
    xn = _layernorm(x, ln1_g[0], ln1_b[0])

    wq = wq_ref[0]
    wk = wk_ref[0]
    wv = wv_ref[0]
    wo = wo_ref[0]
    cdt = wq.dtype                           # matmul compute dtype (bf16 / f32)
    xn_c = xn.astype(cdt)

    # ---- QKV projections on the whole (Bt*S, D) slab; f32 accumulation.
    # 1/sqrt(d_k) was folded into wq in the wrapper (weight-side, once).
    q = jnp.dot(xn_c, wq, preferred_element_type=jnp.float32)
    k = jnp.dot(xn_c, wk, preferred_element_type=jnp.float32)
    v = jnp.dot(xn_c, wv, preferred_element_type=jnp.float32)

    # Per-sequence views: leading-dim split only (minor dim unchanged, cheap).
    q3 = q.astype(cdt).reshape(Bt, S, D)
    k3 = k.astype(cdt).reshape(Bt, S, D)
    v3 = v.astype(cdt).reshape(Bt, S, D)

    # Causal mask built in-kernel (one vreg of iota work, no DMA).
    rows = jax.lax.broadcasted_iota(jnp.int32, (S, S), 0)
    cols = jax.lax.broadcasted_iota(jnp.int32, (S, S), 1)
    allowed = (rows >= cols)[None, :, :]     # (1, S, S), broadcasts over Bt

    # ---- attention: static head loop, batched over Bt via single-batch-dim
    # einsums.  Each head's context is folded straight into its row-slice of
    # the out-projection => lane-dense (M, D) accumulation, no scratch and no
    # d_k-wide masked stores. ----
    attn_out = jnp.zeros((M, D), jnp.float32)
    for h in range(H):
        sl = slice(h * d_k, (h + 1) * d_k)
        qh, kh, vh = q3[:, :, sl], k3[:, :, sl], v3[:, :, sl]
        s = jnp.einsum('bqd,bkd->bqk', qh, kh,
                       preferred_element_type=jnp.float32)       # (Bt,S,S) f32
        # Reference semantics: masked positions get the literal value 1e-9.
        s = jnp.where(allowed, s, jnp.float32(1e-9))
        m = jnp.max(s, axis=-1, keepdims=True)
        e = jnp.exp(s - m)
        p = e * pl.reciprocal(jnp.sum(e, axis=-1, keepdims=True), approx=True)
        ctx = jnp.einsum('bqk,bkd->bqd', p.astype(cdt), vh,
                         preferred_element_type=jnp.float32)     # (Bt,S,d_k)
        attn_out = attn_out + jnp.dot(ctx.reshape(M, d_k).astype(cdt),
                                      wo[sl, :],
                                      preferred_element_type=jnp.float32)

    x = xn + attn_out                        # residual on normalized x (ref)

    # ---- addnorm2 + feed-forward (MyFC has no nonlinearity) ----
    xn2 = _layernorm(x, ln2_g[0], ln2_b[0])
    xn2_c = xn2.astype(cdt)
    h1 = jnp.dot(xn2_c, w1_ref[0],
                 preferred_element_type=jnp.float32) + b1_ref[0]
    h2 = jnp.dot(h1.astype(cdt), w2_ref[0],
                 preferred_element_type=jnp.float32) + b2_ref[0]

    o_ref[...] = xn2 + h2                    # residual on normalized x (ref)


def _pick_batch_tile(B, S):
    kind = ""
    try:
        kind = jax.devices()[0].device_kind.lower()
    except Exception:
        pass
    # v6e/v7x MXU is 256x256; v5e is 128x128.
    target_rows = 256 if ("v6" in kind or "v7" in kind) else 128
    target_bt = max(1, target_rows // max(S, 1))
    # v7x has 2 TensorCores: keep >= 2 "parallel" grid steps when batch permits.
    if "v7" in kind and B >= 2:
        target_bt = min(target_bt, max(1, B // 2))
    best = None
    for cand in range(min(B, target_bt), 0, -1):
        if B % cand != 0:
            continue
        if (cand * S) % 8 == 0 or cand == B:
            best = cand
            break
    return best if best is not None else B


def decoder_stack(x, params, head_num):
    """Runs the whole layer stack in a single fused pallas_call."""
    B, S, D = x.shape
    layers = params["layers"]
    L = len(layers)
    Dff = layers[0]["w1"].shape[1]
    d_k = D // head_num

    bt = _pick_batch_tile(B, S)
    M = bt * S
    grid = (B // bt, L)

    # bf16 MXU inputs (f32 acc) for realistic widths; f32 when D is tiny
    # (latency-bound anyway, keeps numerics close to the f32 reference).
    cdt = jnp.bfloat16 if D >= 128 else jnp.float32
    inv_sqrt_dk = jnp.float32(1.0 / math.sqrt(d_k))

    def stack(name, scale=None, cast=False):
        a = jnp.stack([lyr[name] for lyr in layers], axis=0)
        if scale is not None:
            a = a * scale                    # applied in f32, before any cast
        return a.astype(cdt) if cast else a

    ln1_g = stack("ln1_g")
    ln1_b = stack("ln1_b")
    ln2_g = stack("ln2_g")
    ln2_b = stack("ln2_b")
    wq = stack("wq", scale=inv_sqrt_dk, cast=True)   # score scale folded here
    wk = stack("wk", cast=True)
    wv = stack("wv", cast=True)
    wo = stack("wo", cast=True)
    w1 = stack("w1", cast=True)
    b1 = stack("b1")
    w2 = stack("w2", cast=True)
    b2 = stack("b2")

    x2d = x.reshape(B * S, D)                # free: identical HBM layout

    def per_layer(shape):
        n = len(shape)
        return pl.BlockSpec((1,) + shape, lambda b, l, _n=n: (l,) + (0,) * _n)

    kernel = functools.partial(decoder_stack_kernel, head_num, d_k, S, bt)

    in_specs = [
        pl.BlockSpec((M, D), lambda b, l: (b, 0)),   # activation rows
        per_layer((1, D)), per_layer((1, D)),        # ln1 gamma, beta
        per_layer((D, D)), per_layer((D, D)),        # wq, wk
        per_layer((D, D)), per_layer((D, D)),        # wv, wo
        per_layer((1, D)), per_layer((1, D)),        # ln2 gamma, beta
        per_layer((D, Dff)), per_layer((1, Dff)),    # fc1 w, b
        per_layer((Dff, D)), per_layer((1, D)),      # fc2 w, b
    ]

    out2d = pl.pallas_call(
        kernel,
        out_shape=jax.ShapeDtypeStruct((B * S, D), jnp.float32),
        grid=grid,
        in_specs=in_specs,
        out_specs=pl.BlockSpec((M, D), lambda b, l: (b, 0)),
        compiler_params=pltpu.CompilerParams(
            dimension_semantics=("parallel", "arbitrary"),
            vmem_limit_bytes=48 * 1024 * 1024),      # <= v7x 64 MiB physical
    )(x2d, ln1_g, ln1_b, wq, wk, wv, wo, ln2_g, ln2_b, w1, b1, w2, b2)
    return out2d.reshape(B, S, D)


def init_params(key, vocab_size, d_model, seq_len, d_ff, layer_num):
    keys = jax.random.split(key, 3 + layer_num)
    params = {
        "word_emb": jax.random.normal(keys[0], (vocab_size, d_model),
                                      jnp.float32) * 0.02,
        "pos_emb": jax.random.normal(keys[1], (1, seq_len, d_model),
                                     jnp.float32),
        "layers": [],
    }
    for li in range(layer_num):
        lk = jax.random.split(keys[3 + li], 8)
        s = 0.02
        layer = {
            "ln1_g": jnp.ones((1, d_model), jnp.float32),
            "ln1_b": jnp.zeros((1, d_model), jnp.float32),
            "ln2_g": jnp.ones((1, d_model), jnp.float32),
            "ln2_b": jnp.zeros((1, d_model), jnp.float32),
            "wq": jax.random.normal(lk[0], (d_model, d_model), jnp.float32) * s,
            "wk": jax.random.normal(lk[1], (d_model, d_model), jnp.float32) * s,
            "wv": jax.random.normal(lk[2], (d_model, d_model), jnp.float32) * s,
            "wo": jax.random.normal(lk[3], (d_model, d_model), jnp.float32) * s,
            "w1": jax.random.normal(lk[4], (d_model, d_ff), jnp.float32) * s,
            "b1": jax.random.normal(lk[5], (1, d_ff), jnp.float32) * s,
            "w2": jax.random.normal(lk[6], (d_ff, d_model), jnp.float32) * s,
            "b2": jax.random.normal(lk[7], (1, d_model), jnp.float32) * s,
        }
        params["layers"].append(layer)
    return params


def my_decoder_forward(params, token_ids, head_num):
    # Glue (plain JAX): embedding lookup + positional embedding add.
    B, S = token_ids.shape
    x = jnp.take(params["word_emb"], token_ids, axis=0)        # (B, S, D)
    x = x + params["pos_emb"][:, :S, :]
    # Dropout(p=0.1) -> identity at inference.
    # All decoder layers run inside one fused Pallas kernel.
    return decoder_stack(x, params, head_num)


if __name__ == "__main__":
    vocab_size, d_model, seq_len, head_num, d_ff, layer_num = 50, 32, 8, 4, 64, 2
    batch = 2

    key = jax.random.PRNGKey(0)
    kp, kt = jax.random.split(key)
    params = init_params(kp, vocab_size, d_model, seq_len, d_ff, layer_num)
    token_ids = jax.random.randint(kt, (batch, seq_len), 0, vocab_size,
                                   dtype=jnp.int32)

    fwd = jax.jit(functools.partial(my_decoder_forward, head_num=head_num))
    out = jax.block_until_ready(fwd(params, token_ids))
    assert out.shape == (batch, seq_len, d_model)
    assert bool(jnp.all(jnp.isfinite(out)))
    print("KERNEL_OK")
</pallas_src>

<mosaic_0001>
module attributes {stable_mosaic.version = 11 : i64} {
  func.func @decoder_stack_kernel(%arg0: i32, %arg1: i32, %arg2: memref<16x32xf32, #tpu.memory_space<vmem>>, %arg3: memref<1x1x32xf32, #tpu.memory_space<vmem>>, %arg4: memref<1x1x32xf32, #tpu.memory_space<vmem>>, %arg5: memref<1x32x32xf32, #tpu.memory_space<vmem>>, %arg6: memref<1x32x32xf32, #tpu.memory_space<vmem>>, %arg7: memref<1x32x32xf32, #tpu.memory_space<vmem>>, %arg8: memref<1x32x32xf32, #tpu.memory_space<vmem>>, %arg9: memref<1x1x32xf32, #tpu.memory_space<vmem>>, %arg10: memref<1x1x32xf32, #tpu.memory_space<vmem>>, %arg11: memref<1x32x64xf32, #tpu.memory_space<vmem>>, %arg12: memref<1x1x64xf32, #tpu.memory_space<vmem>>, %arg13: memref<1x64x32xf32, #tpu.memory_space<vmem>>, %arg14: memref<1x1x32xf32, #tpu.memory_space<vmem>>, %arg15: memref<16x32xf32, #tpu.memory_space<vmem>>) attributes {dimension_semantics = [#tpu.dimension_semantics<parallel>, #tpu.dimension_semantics<arbitrary>], iteration_bounds = array<i64: 1, 2>, scalar_prefetch = 0 : i64, scratch_operands = 0 : i64, tpu.core_type = #tpu.core_type<tc>, window_params = [{transform_indices = @transform_0, window_bounds = array<i64: 16, 32>}, {transform_indices = @transform_1, window_bounds = array<i64: 1, 1, 32>}, {transform_indices = @transform_2, window_bounds = array<i64: 1, 1, 32>}, {transform_indices = @transform_3, window_bounds = array<i64: 1, 32, 32>}, {transform_indices = @transform_4, window_bounds = array<i64: 1, 32, 32>}, {transform_indices = @transform_5, window_bounds = array<i64: 1, 32, 32>}, {transform_indices = @transform_6, window_bounds = array<i64: 1, 32, 32>}, {transform_indices = @transform_7, window_bounds = array<i64: 1, 1, 32>}, {transform_indices = @transform_8, window_bounds = array<i64: 1, 1, 32>}, {transform_indices = @transform_9, window_bounds = array<i64: 1, 32, 64>}, {transform_indices = @transform_10, window_bounds = array<i64: 1, 1, 64>}, {transform_indices = @transform_11, window_bounds = array<i64: 1, 64, 32>}, {transform_indices = @transform_12, window_bounds = array<i64: 1, 1, 32>}, {transform_indices = @transform_13, window_bounds = array<i64: 16, 32>}]} {
    %c0_i32 = arith.constant 0 : i32
    %0 = arith.cmpi eq, %arg1, %c0_i32 : i32
    %1 = arith.extui %0 : i1 to i32
    %c0_i32_0 = arith.constant 0 : i32
    %2 = arith.cmpi ne, %1, %c0_i32_0 : i32
    scf.if %2 {
      %c0_79 = arith.constant 0 : index
      %c0_80 = arith.constant 0 : index
      %184 = vector.load %arg2[%c0_79, %c0_80] : memref<16x32xf32, #tpu.memory_space<vmem>>, vector<16x32xf32>
      %c0_81 = arith.constant 0 : index
      %c0_82 = arith.constant 0 : index
      %185 = vector.load %arg15[%c0_81, %c0_82] : memref<16x32xf32, #tpu.memory_space<vmem>>, vector<16x32xf32>
      tpu.vector_store %arg15[%c0_81, %c0_82], %184 {strides = array<i32>} : memref<16x32xf32, #tpu.memory_space<vmem>>, vector<16x32xf32>,
    } else {
    }
    %c0 = arith.constant 0 : index
    %c0_1 = arith.constant 0 : index
    %3 = vector.load %arg15[%c0, %c0_1] : memref<16x32xf32, #tpu.memory_space<vmem>>, vector<16x32xf32>
    %c0_2 = arith.constant 0 : index
    %c0_3 = arith.constant 0 : index
    %c0_4 = arith.constant 0 : index
    %4 = vector.load %arg3[%c0_2, %c0_3, %c0_4] : memref<1x1x32xf32, #tpu.memory_space<vmem>>, vector<1x1x32xf32>
    %5 = vector.shape_cast %4 : vector<1x1x32xf32> to vector<1x32xf32>
    %c0_5 = arith.constant 0 : index
    %c0_6 = arith.constant 0 : index
    %c0_7 = arith.constant 0 : index
    %6 = vector.load %arg4[%c0_5, %c0_6, %c0_7] : memref<1x1x32xf32, #tpu.memory_space<vmem>>, vector<1x1x32xf32>
    %7 = vector.shape_cast %6 : vector<1x1x32xf32> to vector<1x32xf32>
    %cst = arith.constant dense<0.000000e+00> : vector<16xf32>
    %8 = vector.multi_reduction <add>, %3, %cst [1] : vector<16x32xf32> to vector<16xf32>
    %9 = vector.shape_cast %8 : vector<16xf32> to vector<16x1xf32>
    %cst_8 = arith.constant 3.200000e+01 : f32
    %10 = vector.broadcast %cst_8 : f32 to vector<16x1xf32>
    %11 = arith.divf %9, %10 : vector<16x1xf32>
    %12 = vector.broadcast %11 : vector<16x1xf32> to vector<16x32xf32>
    %13 = arith.subf %3, %12 : vector<16x32xf32>
    %14 = arith.mulf %13, %13 : vector<16x32xf32>
    %cst_9 = arith.constant dense<0.000000e+00> : vector<16xf32>
    %15 = vector.multi_reduction <add>, %14, %cst_9 [1] : vector<16x32xf32> to vector<16xf32>
    %16 = vector.shape_cast %15 : vector<16xf32> to vector<16x1xf32>
    %cst_10 = arith.constant 3.200000e+01 : f32
    %17 = vector.broadcast %cst_10 : f32 to vector<16x1xf32>
    %18 = arith.divf %16, %17 : vector<16x1xf32>
    %19 = vector.broadcast %11 : vector<16x1xf32> to vector<16x32xf32>
    %20 = arith.subf %3, %19 : vector<16x32xf32>
    %cst_11 = arith.constant 9.99999974E-6 : f32
    %21 = vector.broadcast %cst_11 : f32 to vector<16x1xf32>
    %22 = arith.addf %18, %21 : vector<16x1xf32>
    %23 = math.rsqrt %22 : vector<16x1xf32>
    %24 = vector.broadcast %23 : vector<16x1xf32> to vector<16x32xf32>
    %25 = arith.mulf %20, %24 : vector<16x32xf32>
    %26 = vector.broadcast %5 : vector<1x32xf32> to vector<16x32xf32>
    %27 = arith.mulf %25, %26 : vector<16x32xf32>
    %28 = vector.broadcast %7 : vector<1x32xf32> to vector<16x32xf32>
    %29 = arith.addf %27, %28 : vector<16x32xf32>
    %c0_12 = arith.constant 0 : index
    %c0_13 = arith.constant 0 : index
    %c0_14 = arith.constant 0 : index
    %30 = vector.load %arg5[%c0_12, %c0_13, %c0_14] : memref<1x32x32xf32, #tpu.memory_space<vmem>>, vector<1x32x32xf32>
    %31 = vector.shape_cast %30 : vector<1x32x32xf32> to vector<32x32xf32>
    %c0_15 = arith.constant 0 : index
    %c0_16 = arith.constant 0 : index
    %c0_17 = arith.constant 0 : index
    %32 = vector.load %arg6[%c0_15, %c0_16, %c0_17] : memref<1x32x32xf32, #tpu.memory_space<vmem>>, vector<1x32x32xf32>
    %33 = vector.shape_cast %32 : vector<1x32x32xf32> to vector<32x32xf32>
    %c0_18 = arith.constant 0 : index
    %c0_19 = arith.constant 0 : index
    %c0_20 = arith.constant 0 : index
    %34 = vector.load %arg7[%c0_18, %c0_19, %c0_20] : memref<1x32x32xf32, #tpu.memory_space<vmem>>, vector<1x32x32xf32>
    %35 = vector.shape_cast %34 : vector<1x32x32xf32> to vector<32x32xf32>
    %c0_21 = arith.constant 0 : index
    %c0_22 = arith.constant 0 : index
    %c0_23 = arith.constant 0 : index
    %36 = vector.load %arg8[%c0_21, %c0_22, %c0_23] : memref<1x32x32xf32, #tpu.memory_space<vmem>>, vector<1x32x32xf32>
    %37 = vector.shape_cast %36 : vector<1x32x32xf32> to vector<32x32xf32>
    %cst_24 = arith.constant dense<0.000000e+00> : vector<16x32xf32>
    %38 = tpu.matmul %29, %31, %cst_24 {dimension_numbers = #tpu.dot_dimension_numbers<[1], [0], [0], [1], [0, 0, 1, 1], [], []>} : vector<16x32xf32>, vector<32x32xf32>, vector<16x32xf32> -> vector<16x32xf32>
    %cst_25 = arith.constant dense<0.000000e+00> : vector<16x32xf32>
    %39 = tpu.matmul %29, %33, %cst_25 {dimension_numbers = #tpu.dot_dimension_numbers<[1], [0], [0], [1], [0, 0, 1, 1], [], []>} : vector<16x32xf32>, vector<32x32xf32>, vector<16x32xf32> -> vector<16x32xf32>
    %cst_26 = arith.constant dense<0.000000e+00> : vector<16x32xf32>
    %40 = tpu.matmul %29, %35, %cst_26 {dimension_numbers = #tpu.dot_dimension_numbers<[1], [0], [0], [1], [0, 0, 1, 1], [], []>} : vector<16x32xf32>, vector<32x32xf32>, vector<16x32xf32> -> vector<16x32xf32>
    %41 = vector.shape_cast %38 : vector<16x32xf32> to vector<2x8x32xf32>
    %42 = vector.shape_cast %39 : vector<16x32xf32> to vector<2x8x32xf32>
    %43 = vector.shape_cast %40 : vector<16x32xf32> to vector<2x8x32xf32>
    %44 = tpu.iota {dimensions = array<i32: 0>} : vector<8x8xi32>
    %45 = tpu.iota {dimensions = array<i32: 1>} : vector<8x8xi32>
    %46 = arith.cmpi sge, %44, %45 : vector<8x8xi32>
    %47 = vector.shape_cast %46 : vector<8x8xi1> to vector<1x8x8xi1>
    %cst_27 = arith.constant 0.000000e+00 : f32
    %48 = vector.broadcast %cst_27 : f32 to vector<16x32xf32>
    %49 = vector.extract_strided_slice %41 {offsets = [0, 0, 0], sizes = [2, 8, 8], strides = [1, 1, 1]} : vector<2x8x32xf32> to vector<2x8x8xf32>
    %50 = vector.extract_strided_slice %42 {offsets = [0, 0, 0], sizes = [2, 8, 8], strides = [1, 1, 1]} : vector<2x8x32xf32> to vector<2x8x8xf32>
    %51 = vector.extract_strided_slice %43 {offsets = [0, 0, 0], sizes = [2, 8, 8], strides = [1, 1, 1]} : vector<2x8x32xf32> to vector<2x8x8xf32>
    "tpu.trace_start"() <{level = 10 : i32, message = "bqd,bkd->bqk"}> : () -> ()
    %cst_28 = arith.constant dense<0.000000e+00> : vector<2x8x8xf32>
    %52 = tpu.matmul %49, %50, %cst_28 {dimension_numbers = #tpu.dot_dimension_numbers<[2], [2], [1], [1], [0, 0, 0, 1, 1, 1], [0], [0]>} : vector<2x8x8xf32>, vector<2x8x8xf32>, vector<2x8x8xf32> -> vector<2x8x8xf32>
    %cst_29 = arith.constant 9.99999971E-10 : f32
    "tpu.trace_stop"() : () -> ()
    %53 = vector.shape_cast %47 : vector<1x8x8xi1> to vector<1x8x8xi1>
    %54 = vector.broadcast %53 : vector<1x8x8xi1> to vector<2x8x8xi1>
    %55 = vector.broadcast %cst_29 : f32 to vector<2x8x8xf32>
    %56 = arith.select %54, %52, %55 : vector<2x8x8xi1>, vector<2x8x8xf32>
    %cst_30 = arith.constant dense<0xFF800000> : vector<2x8xf32>
    %57 = vector.multi_reduction <maximumf>, %56, %cst_30 [2] : vector<2x8x8xf32> to vector<2x8xf32>
    %58 = vector.shape_cast %57 : vector<2x8xf32> to vector<2x8x1xf32>
    %59 = vector.broadcast %58 : vector<2x8x1xf32> to vector<2x8x8xf32>
    %60 = arith.subf %56, %59 : vector<2x8x8xf32>
    %61 = math.exp %60 : vector<2x8x8xf32>
    %cst_31 = arith.constant dense<0.000000e+00> : vector<2x8xf32>
    %62 = vector.multi_reduction <add>, %61, %cst_31 [2] : vector<2x8x8xf32> to vector<2x8xf32>
    %63 = vector.shape_cast %62 : vector<2x8xf32> to vector<2x8x1xf32>
    %64 = tpu.reciprocal %63 {approx = true} : vector<2x8x1xf32> -> vector<2x8x1xf32>
    %65 = vector.broadcast %64 : vector<2x8x1xf32> to vector<2x8x8xf32>
    %66 = arith.mulf %61, %65 : vector<2x8x8xf32>
    "tpu.trace_start"() <{level = 10 : i32, message = "bqk,bkd->bqd"}> : () -> ()
    %cst_32 = arith.constant dense<0.000000e+00> : vector<2x8x8xf32>
    %67 = tpu.matmul %66, %51, %cst_32 {dimension_numbers = #tpu.dot_dimension_numbers<[2], [1], [1], [2], [0, 0, 0, 1, 1, 2], [0], [0]>} : vector<2x8x8xf32>, vector<2x8x8xf32>, vector<2x8x8xf32> -> vector<2x8x8xf32>
    "tpu.trace_stop"() : () -> ()
    %68 = vector.shape_cast %67 : vector<2x8x8xf32> to vector<16x8xf32>
    %69 = vector.extract_strided_slice %37 {offsets = [0, 0], sizes = [8, 32], strides = [1, 1]} : vector<32x32xf32> to vector<8x32xf32>
    %cst_33 = arith.constant dense<0.000000e+00> : vector<16x32xf32>
    %70 = tpu.matmul %68, %69, %cst_33 {dimension_numbers = #tpu.dot_dimension_numbers<[1], [0], [0], [1], [0, 0, 1, 1], [], []>} : vector<16x8xf32>, vector<8x32xf32>, vector<16x32xf32> -> vector<16x32xf32>
    %71 = arith.addf %48, %70 : vector<16x32xf32>
    %72 = vector.extract_strided_slice %41 {offsets = [0, 0, 8], sizes = [2, 8, 8], strides = [1, 1, 1]} : vector<2x8x32xf32> to vector<2x8x8xf32>
    %73 = vector.extract_strided_slice %42 {offsets = [0, 0, 8], sizes = [2, 8, 8], strides = [1, 1, 1]} : vector<2x8x32xf32> to vector<2x8x8xf32>
    %74 = vector.extract_strided_slice %43 {offsets = [0, 0, 8], sizes = [2, 8, 8], strides = [1, 1, 1]} : vector<2x8x32xf32> to vector<2x8x8xf32>
    "tpu.trace_start"() <{level = 10 : i32, message = "bqd,bkd->bqk"}> : () -> ()
    %cst_34 = arith.constant dense<0.000000e+00> : vector<2x8x8xf32>
    %75 = tpu.matmul %72, %73, %cst_34 {dimension_numbers = #tpu.dot_dimension_numbers<[2], [2], [1], [1], [0, 0, 0, 1, 1, 1], [0], [0]>} : vector<2x8x8xf32>, vector<2x8x8xf32>, vector<2x8x8xf32> -> vector<2x8x8xf32>
    %cst_35 = arith.constant 9.99999971E-10 : f32
    "tpu.trace_stop"() : () -> ()
    %76 = vector.shape_cast %47 : vector<1x8x8xi1> to vector<1x8x8xi1>
    %77 = vector.broadcast %76 : vector<1x8x8xi1> to vector<2x8x8xi1>
    %78 = vector.broadcast %cst_35 : f32 to vector<2x8x8xf32>
    %79 = arith.select %77, %75, %78 : vector<2x8x8xi1>, vector<2x8x8xf32>
    %cst_36 = arith.constant dense<0xFF800000> : vector<2x8xf32>
    %80 = vector.multi_reduction <maximumf>, %79, %cst_36 [2] : vector<2x8x8xf32> to vector<2x8xf32>
    %81 = vector.shape_cast %80 : vector<2x8xf32> to vector<2x8x1xf32>
    %82 = vector.broadcast %81 : vector<2x8x1xf32> to vector<2x8x8xf32>
    %83 = arith.subf %79, %82 : vector<2x8x8xf32>
    %84 = math.exp %83 : vector<2x8x8xf32>
    %cst_37 = arith.constant dense<0.000000e+00> : vector<2x8xf32>
    %85 = vector.multi_reduction <add>, %84, %cst_37 [2] : vector<2x8x8xf32> to vector<2x8xf32>
    %86 = vector.shape_cast %85 : vector<2x8xf32> to vector<2x8x1xf32>
    %87 = tpu.reciprocal %86 {approx = true} : vector<2x8x1xf32> -> vector<2x8x1xf32>
    %88 = vector.broadcast %87 : vector<2x8x1xf32> to vector<2x8x8xf32>
    %89 = arith.mulf %84, %88 : vector<2x8x8xf32>
    "tpu.trace_start"() <{level = 10 : i32, message = "bqk,bkd->bqd"}> : () -> ()
    %cst_38 = arith.constant dense<0.000000e+00> : vector<2x8x8xf32>
    %90 = tpu.matmul %89, %74, %cst_38 {dimension_numbers = #tpu.dot_dimension_numbers<[2], [1], [1], [2], [0, 0, 0, 1, 1, 2], [0], [0]>} : vector<2x8x8xf32>, vector<2x8x8xf32>, vector<2x8x8xf32> -> vector<2x8x8xf32>
    "tpu.trace_stop"() : () -> ()
    %91 = vector.shape_cast %90 : vector<2x8x8xf32> to vector<16x8xf32>
    %92 = vector.extract_strided_slice %37 {offsets = [8, 0], sizes = [8, 32], strides = [1, 1]} : vector<32x32xf32> to vector<8x32xf32>
    %cst_39 = arith.constant dense<0.000000e+00> : vector<16x32xf32>
    %93 = tpu.matmul %91, %92, %cst_39 {dimension_numbers = #tpu.dot_dimension_numbers<[1], [0], [0], [1], [0, 0, 1, 1], [], []>} : vector<16x8xf32>, vector<8x32xf32>, vector<16x32xf32> -> vector<16x32xf32>
    %94 = arith.addf %71, %93 : vector<16x32xf32>
    %95 = vector.extract_strided_slice %41 {offsets = [0, 0, 16], sizes = [2, 8, 8], strides = [1, 1, 1]} : vector<2x8x32xf32> to vector<2x8x8xf32>
    %96 = vector.extract_strided_slice %42 {offsets = [0, 0, 16], sizes = [2, 8, 8], strides = [1, 1, 1]} : vector<2x8x32xf32> to vector<2x8x8xf32>
    %97 = vector.extract_strided_slice %43 {offsets = [0, 0, 16], sizes = [2, 8, 8], strides = [1, 1, 1]} : vector<2x8x32xf32> to vector<2x8x8xf32>
    "tpu.trace_start"() <{level = 10 : i32, message = "bqd,bkd->bqk"}> : () -> ()
    %cst_40 = arith.constant dense<0.000000e+00> : vector<2x8x8xf32>
    %98 = tpu.matmul %95, %96, %cst_40 {dimension_numbers = #tpu.dot_dimension_numbers<[2], [2], [1], [1], [0, 0, 0, 1, 1, 1], [0], [0]>} : vector<2x8x8xf32>, vector<2x8x8xf32>, vector<2x8x8xf32> -> vector<2x8x8xf32>
    %cst_41 = arith.constant 9.99999971E-10 : f32
    "tpu.trace_stop"() : () -> ()
    %99 = vector.shape_cast %47 : vector<1x8x8xi1> to vector<1x8x8xi1>
    %100 = vector.broadcast %99 : vector<1x8x8xi1> to vector<2x8x8xi1>
    %101 = vector.broadcast %cst_41 : f32 to vector<2x8x8xf32>
    %102 = arith.select %100, %98, %101 : vector<2x8x8xi1>, vector<2x8x8xf32>
    %cst_42 = arith.constant dense<0xFF800000> : vector<2x8xf32>
    %103 = vector.multi_reduction <maximumf>, %102, %cst_42 [2] : vector<2x8x8xf32> to vector<2x8xf32>
    %104 = vector.shape_cast %103 : vector<2x8xf32> to vector<2x8x1xf32>
    %105 = vector.broadcast %104 : vector<2x8x1xf32> to vector<2x8x8xf32>
    %106 = arith.subf %102, %105 : vector<2x8x8xf32>
    %107 = math.exp %106 : vector<2x8x8xf32>
    %cst_43 = arith.constant dense<0.000000e+00> : vector<2x8xf32>
    %108 = vector.multi_reduction <add>, %107, %cst_43 [2] : vector<2x8x8xf32> to vector<2x8xf32>
    %109 = vector.shape_cast %108 : vector<2x8xf32> to vector<2x8x1xf32>
    %110 = tpu.reciprocal %109 {approx = true} : vector<2x8x1xf32> -> vector<2x8x1xf32>
    %111 = vector.broadcast %110 : vector<2x8x1xf32> to vector<2x8x8xf32>
    %112 = arith.mulf %107, %111 : vector<2x8x8xf32>
    "tpu.trace_start"() <{level = 10 : i32, message = "bqk,bkd->bqd"}> : () -> ()
    %cst_44 = arith.constant dense<0.000000e+00> : vector<2x8x8xf32>
    %113 = tpu.matmul %112, %97, %cst_44 {dimension_numbers = #tpu.dot_dimension_numbers<[2], [1], [1], [2], [0, 0, 0, 1, 1, 2], [0], [0]>} : vector<2x8x8xf32>, vector<2x8x8xf32>, vector<2x8x8xf32> -> vector<2x8x8xf32>
    "tpu.trace_stop"() : () -> ()
    %114 = vector.shape_cast %113 : vector<2x8x8xf32> to vector<16x8xf32>
    %115 = vector.extract_strided_slice %37 {offsets = [16, 0], sizes = [8, 32], strides = [1, 1]} : vector<32x32xf32> to vector<8x32xf32>
    %cst_45 = arith.constant dense<0.000000e+00> : vector<16x32xf32>
    %116 = tpu.matmul %114, %115, %cst_45 {dimension_numbers = #tpu.dot_dimension_numbers<[1], [0], [0], [1], [0, 0, 1, 1], [], []>} : vector<16x8xf32>, vector<8x32xf32>, vector<16x32xf32> -> vector<16x32xf32>
    %117 = arith.addf %94, %116 : vector<16x32xf32>
    %118 = vector.extract_strided_slice %41 {offsets = [0, 0, 24], sizes = [2, 8, 8], strides = [1, 1, 1]} : vector<2x8x32xf32> to vector<2x8x8xf32>
    %119 = vector.extract_strided_slice %42 {offsets = [0, 0, 24], sizes = [2, 8, 8], strides = [1, 1, 1]} : vector<2x8x32xf32> to vector<2x8x8xf32>
    %120 = vector.extract_strided_slice %43 {offsets = [0, 0, 24], sizes = [2, 8, 8], strides = [1, 1, 1]} : vector<2x8x32xf32> to vector<2x8x8xf32>
    "tpu.trace_start"() <{level = 10 : i32, message = "bqd,bkd->bqk"}> : () -> ()
    %cst_46 = arith.constant dense<0.000000e+00> : vector<2x8x8xf32>
    %121 = tpu.matmul %118, %119, %cst_46 {dimension_numbers = #tpu.dot_dimension_numbers<[2], [2], [1], [1], [0, 0, 0, 1, 1, 1], [0], [0]>} : vector<2x8x8xf32>, vector<2x8x8xf32>, vector<2x8x8xf32> -> vector<2x8x8xf32>
    %cst_47 = arith.constant 9.99999971E-10 : f32
    "tpu.trace_stop"() : () -> ()
    %122 = vector.shape_cast %47 : vector<1x8x8xi1> to vector<1x8x8xi1>
    %123 = vector.broadcast %122 : vector<1x8x8xi1> to vector<2x8x8xi1>
    %124 = vector.broadcast %cst_47 : f32 to vector<2x8x8xf32>
    %125 = arith.select %123, %121, %124 : vector<2x8x8xi1>, vector<2x8x8xf32>
    %cst_48 = arith.constant dense<0xFF800000> : vector<2x8xf32>
    %126 = vector.multi_reduction <maximumf>, %125, %cst_48 [2] : vector<2x8x8xf32> to vector<2x8xf32>
    %127 = vector.shape_cast %126 : vector<2x8xf32> to vector<2x8x1xf32>
    %128 = vector.broadcast %127 : vector<2x8x1xf32> to vector<2x8x8xf32>
    %129 = arith.subf %125, %128 : vector<2x8x8xf32>
    %130 = math.exp %129 : vector<2x8x8xf32>
    %cst_49 = arith.constant dense<0.000000e+00> : vector<2x8xf32>
    %131 = vector.multi_reduction <add>, %130, %cst_49 [2] : vector<2x8x8xf32> to vector<2x8xf32>
    %132 = vector.shape_cast %131 : vector<2x8xf32> to vector<2x8x1xf32>
    %133 = tpu.reciprocal %132 {approx = true} : vector<2x8x1xf32> -> vector<2x8x1xf32>
    %134 = vector.broadcast %133 : vector<2x8x1xf32> to vector<2x8x8xf32>
    %135 = arith.mulf %130, %134 : vector<2x8x8xf32>
    "tpu.trace_start"() <{level = 10 : i32, message = "bqk,bkd->bqd"}> : () -> ()
    %cst_50 = arith.constant dense<0.000000e+00> : vector<2x8x8xf32>
    %136 = tpu.matmul %135, %120, %cst_50 {dimension_numbers = #tpu.dot_dimension_numbers<[2], [1], [1], [2], [0, 0, 0, 1, 1, 2], [0], [0]>} : vector<2x8x8xf32>, vector<2x8x8xf32>, vector<2x8x8xf32> -> vector<2x8x8xf32>
    "tpu.trace_stop"() : () -> ()
    %137 = vector.shape_cast %136 : vector<2x8x8xf32> to vector<16x8xf32>
    %138 = vector.extract_strided_slice %37 {offsets = [24, 0], sizes = [8, 32], strides = [1, 1]} : vector<32x32xf32> to vector<8x32xf32>
    %cst_51 = arith.constant dense<0.000000e+00> : vector<16x32xf32>
    %139 = tpu.matmul %137, %138, %cst_51 {dimension_numbers = #tpu.dot_dimension_numbers<[1], [0], [0], [1], [0, 0, 1, 1], [], []>} : vector<16x8xf32>, vector<8x32xf32>, vector<16x32xf32> -> vector<16x32xf32>
    %140 = arith.addf %117, %139 : vector<16x32xf32>
    %141 = arith.addf %29, %140 : vector<16x32xf32>
    %c0_52 = arith.constant 0 : index
    %c0_53 = arith.constant 0 : index
    %c0_54 = arith.constant 0 : index
    %142 = vector.load %arg9[%c0_52, %c0_53, %c0_54] : memref<1x1x32xf32, #tpu.memory_space<vmem>>, vector<1x1x32xf32>
    %143 = vector.shape_cast %142 : vector<1x1x32xf32> to vector<1x32xf32>
    %c0_55 = arith.constant 0 : index
    %c0_56 = arith.constant 0 : index
    %c0_57 = arith.constant 0 : index
    %144 = vector.load %arg10[%c0_55, %c0_56, %c0_57] : memref<1x1x32xf32, #tpu.memory_space<vmem>>, vector<1x1x32xf32>
    %145 = vector.shape_cast %144 : vector<1x1x32xf32> to vector<1x32xf32>
    %cst_58 = arith.constant dense<0.000000e+00> : vector<16xf32>
    %146 = vector.multi_reduction <add>, %141, %cst_58 [1] : vector<16x32xf32> to vector<16xf32>
    %147 = vector.shape_cast %146 : vector<16xf32> to vector<16x1xf32>
    %cst_59 = arith.constant 3.200000e+01 : f32
    %148 = vector.broadcast %cst_59 : f32 to vector<16x1xf32>
    %149 = arith.divf %147, %148 : vector<16x1xf32>
    %150 = vector.broadcast %149 : vector<16x1xf32> to vector<16x32xf32>
    %151 = arith.subf %141, %150 : vector<16x32xf32>
    %152 = arith.mulf %151, %151 : vector<16x32xf32>
    %cst_60 = arith.constant dense<0.000000e+00> : vector<16xf32>
    %153 = vector.multi_reduction <add>, %152, %cst_60 [1] : vector<16x32xf32> to vector<16xf32>
    %154 = vector.shape_cast %153 : vector<16xf32> to vector<16x1xf32>
    %cst_61 = arith.constant 3.200000e+01 : f32
    %155 = vector.broadcast %cst_61 : f32 to vector<16x1xf32>
    %156 = arith.divf %154, %155 : vector<16x1xf32>
    %157 = vector.broadcast %149 : vector<16x1xf32> to vector<16x32xf32>
    %158 = arith.subf %141, %157 : vector<16x32xf32>
    %cst_62 = arith.constant 9.99999974E-6 : f32
    %159 = vector.broadcast %cst_62 : f32 to vector<16x1xf32>
    %160 = arith.addf %156, %159 : vector<16x1xf32>
    %161 = math.rsqrt %160 : vector<16x1xf32>
    %162 = vector.broadcast %161 : vector<16x1xf32> to vector<16x32xf32>
    %163 = arith.mulf %158, %162 : vector<16x32xf32>
    %164 = vector.broadcast %143 : vector<1x32xf32> to vector<16x32xf32>
    %165 = arith.mulf %163, %164 : vector<16x32xf32>
    %166 = vector.broadcast %145 : vector<1x32xf32> to vector<16x32xf32>
    %167 = arith.addf %165, %166 : vector<16x32xf32>
    %c0_63 = arith.constant 0 : index
    %c0_64 = arith.constant 0 : index
    %c0_65 = arith.constant 0 : index
    %168 = vector.load %arg11[%c0_63, %c0_64, %c0_65] : memref<1x32x64xf32, #tpu.memory_space<vmem>>, vector<1x32x64xf32>
    %169 = vector.shape_cast %168 : vector<1x32x64xf32> to vector<32x64xf32>
    %cst_66 = arith.constant dense<0.000000e+00> : vector<16x64xf32>
    %170 = tpu.matmul %167, %169, %cst_66 {dimension_numbers = #tpu.dot_dimension_numbers<[1], [0], [0], [1], [0, 0, 1, 1], [], []>} : vector<16x32xf32>, vector<32x64xf32>, vector<16x64xf32> -> vector<16x64xf32>
    %c0_67 = arith.constant 0 : index
    %c0_68 = arith.constant 0 : index
    %c0_69 = arith.constant 0 : index
    %171 = vector.load %arg12[%c0_67, %c0_68, %c0_69] : memref<1x1x64xf32, #tpu.memory_space<vmem>>, vector<1x1x64xf32>
    %172 = vector.shape_cast %171 : vector<1x1x64xf32> to vector<1x64xf32>
    %173 = vector.broadcast %172 : vector<1x64xf32> to vector<16x64xf32>
    %174 = arith.addf %170, %173 : vector<16x64xf32>
    %c0_70 = arith.constant 0 : index
    %c0_71 = arith.constant 0 : index
    %c0_72 = arith.constant 0 : index
    %175 = vector.load %arg13[%c0_70, %c0_71, %c0_72] : memref<1x64x32xf32, #tpu.memory_space<vmem>>, vector<1x64x32xf32>
    %176 = vector.shape_cast %175 : vector<1x64x32xf32> to vector<64x32xf32>
    %cst_73 = arith.constant dense<0.000000e+00> : vector<16x32xf32>
    %177 = tpu.matmul %174, %176, %cst_73 {dimension_numbers = #tpu.dot_dimension_numbers<[1], [0], [0], [1], [0, 0, 1, 1], [], []>} : vector<16x64xf32>, vector<64x32xf32>, vector<16x32xf32> -> vector<16x32xf32>
    %c0_74 = arith.constant 0 : index
    %c0_75 = arith.constant 0 : index
    %c0_76 = arith.constant 0 : index
    %178 = vector.load %arg14[%c0_74, %c0_75, %c0_76] : memref<1x1x32xf32, #tpu.memory_space<vmem>>, vector<1x1x32xf32>
    %179 = vector.shape_cast %178 : vector<1x1x32xf32> to vector<1x32xf32>
    %180 = vector.broadcast %179 : vector<1x32xf32> to vector<16x32xf32>
    %181 = arith.addf %177, %180 : vector<16x32xf32>
    %182 = arith.addf %167, %181 : vector<16x32xf32>
    %c0_77 = arith.constant 0 : index
    %c0_78 = arith.constant 0 : index
    %183 = vector.load %arg15[%c0_77, %c0_78] : memref<16x32xf32, #tpu.memory_space<vmem>>, vector<16x32xf32>
    tpu.vector_store %arg15[%c0_77, %c0_78], %182 {strides = array<i32>} : memref<16x32xf32, #tpu.memory_space<vmem>>, vector<16x32xf32>,
    return
  }
  func.func @transform_0(%arg0: i32, %arg1: i32) -> (i32, i32) {
    %c0_i32 = arith.constant 0 : i32
    %c0_i32_0 = arith.constant 0 : i32
    return %arg0, %c0_i32 : i32, i32
  }
  func.func @transform_1(%arg0: i32, %arg1: i32) -> (i32, i32, i32) {
    %c0_i32 = arith.constant 0 : i32
    %c0_i32_0 = arith.constant 0 : i32
    %c0_i32_1 = arith.constant 0 : i32
    return %arg1, %c0_i32, %c0_i32_0 : i32, i32, i32
  }
  func.func @transform_2(%arg0: i32, %arg1: i32) -> (i32, i32, i32) {
    %c0_i32 = arith.constant 0 : i32
    %c0_i32_0 = arith.constant 0 : i32
    %c0_i32_1 = arith.constant 0 : i32
    return %arg1, %c0_i32, %c0_i32_0 : i32, i32, i32
  }
  func.func @transform_3(%arg0: i32, %arg1: i32) -> (i32, i32, i32) {
    %c0_i32 = arith.constant 0 : i32
    %c0_i32_0 = arith.constant 0 : i32
    %c0_i32_1 = arith.constant 0 : i32
    return %arg1, %c0_i32, %c0_i32_0 : i32, i32, i32
  }
  func.func @transform_4(%arg0: i32, %arg1: i32) -> (i32, i32, i32) {
    %c0_i32 = arith.constant 0 : i32
    %c0_i32_0 = arith.constant 0 : i32
    %c0_i32_1 = arith.constant 0 : i32
    return %arg1, %c0_i32, %c0_i32_0 : i32, i32, i32
  }
  func.func @transform_5(%arg0: i32, %arg1: i32) -> (i32, i32, i32) {
    %c0_i32 = arith.constant 0 : i32
    %c0_i32_0 = arith.constant 0 : i32
    %c0_i32_1 = arith.constant 0 : i32
    return %arg1, %c0_i32, %c0_i32_0 : i32, i32, i32
  }
  func.func @transform_6(%arg0: i32, %arg1: i32) -> (i32, i32, i32) {
    %c0_i32 = arith.constant 0 : i32
    %c0_i32_0 = arith.constant 0 : i32
    %c0_i32_1 = arith.constant 0 : i32
    return %arg1, %c0_i32, %c0_i32_0 : i32, i32, i32
  }
  func.func @transform_7(%arg0: i32, %arg1: i32) -> (i32, i32, i32) {
    %c0_i32 = arith.constant 0 : i32
    %c0_i32_0 = arith.constant 0 : i32
    %c0_i32_1 = arith.constant 0 : i32
    return %arg1, %c0_i32, %c0_i32_0 : i32, i32, i32
  }
  func.func @transform_8(%arg0: i32, %arg1: i32) -> (i32, i32, i32) {
    %c0_i32 = arith.constant 0 : i32
    %c0_i32_0 = arith.constant 0 : i32
    %c0_i32_1 = arith.constant 0 : i32
    return %arg1, %c0_i32, %c0_i32_0 : i32, i32, i32
  }
  func.func @transform_9(%arg0: i32, %arg1: i32) -> (i32, i32, i32) {
    %c0_i32 = arith.constant 0 : i32
    %c0_i32_0 = arith.constant 0 : i32
    %c0_i32_1 = arith.constant 0 : i32
    return %arg1, %c0_i32, %c0_i32_0 : i32, i32, i32
  }
  func.func @transform_10(%arg0: i32, %arg1: i32) -> (i32, i32, i32) {
    %c0_i32 = arith.constant 0 : i32
    %c0_i32_0 = arith.constant 0 : i32
    %c0_i32_1 = arith.constant 0 : i32
    return %arg1, %c0_i32, %c0_i32_0 : i32, i32, i32
  }
  func.func @transform_11(%arg0: i32, %arg1: i32) -> (i32, i32, i32) {
    %c0_i32 = arith.constant 0 : i32
    %c0_i32_0 = arith.constant 0 : i32
    %c0_i32_1 = arith.constant 0 : i32
    return %arg1, %c0_i32, %c0_i32_0 : i32, i32, i32
  }
  func.func @transform_12(%arg0: i32, %arg1: i32) -> (i32, i32, i32) {
    %c0_i32 = arith.constant 0 : i32
    %c0_i32_0 = arith.constant 0 : i32
    %c0_i32_1 = arith.constant 0 : i32
    return %arg1, %c0_i32, %c0_i32_0 : i32, i32, i32
  }
  func.func @transform_13(%arg0: i32, %arg1: i32) -> (i32, i32) {
    %c0_i32 = arith.constant 0 : i32
    %c0_i32_0 = arith.constant 0 : i32
    return %arg0, %c0_i32 : i32, i32
  }
}

</mosaic_0001>

<bundles_post_ra>
// kernel: my_decoder_forward.1
= control target key start
LH: loop header
LB: loop body
LE: loop exit
PB: predicated region body
PF: predicated region fallthrough
CT: control target
= control target key end

     0   :  { %s3945_s0 = inlined_call_operand.vmem [shape: f32[16,32], index: 0, kind: input, shape index: {}]   ;;  %s3946_s1 = inlined_call_operand.vmem [shape: f32[2,1,32], index: 1, kind: input, shape index: {}]   ;;  %s3947_s2 = inlined_call_operand.vmem [shape: f32[2,1,32], index: 2, kind: input, shape index: {}]   ;;  %s3948_s3 = inlined_call_operand.vmem [shape: f32[2,32,32], index: 3, kind: input, shape index: {}]   ;;  %s3949_s4 = inlined_call_operand.vmem [shape: f32[2,32,32], index: 4, kind: input, shape index: {}]   ;;  %s3950_s5 = inlined_call_operand.vmem [shape: f32[2,32,32], index: 5, kind: input, shape index: {}]   ;;  %s3951_s6 = inlined_call_operand.vmem [shape: f32[2,32,32], index: 6, kind: input, shape index: {}]   ;;  %s3952_s7 = inlined_call_operand.vmem [shape: f32[2,1,32], index: 7, kind: input, shape index: {}]   ;;  %s3953_s8 = inlined_call_operand.vmem [shape: f32[2,1,32], index: 8, kind: input, shape index: {}]   ;;  %s3954_s9 = inlined_call_operand.vmem [shape: f32[2,32,64], index: 9, kind: input, shape index: {}]   ;;  %s3955_s10 = inlined_call_operand.vmem [shape: f32[2,1,64], index: 10, kind: input, shape index: {}]   ;;  %s3956_s11 = inlined_call_operand.vmem [shape: f32[2,64,32], index: 11, kind: input, shape index: {}]   ;;  %s3957_s12 = inlined_call_operand.vmem [shape: f32[2,1,32], index: 12, kind: input, shape index: {}]   ;;  %s3958_s13 = inlined_call_operand.hbm [shape: f32[16,32], index: 13, kind: output, shape index: {}]  }
   0x1   :  { %3961 = sst [smem:[#allocation8_spill]] %s3948_s3 }
   0x2   :  { %3962 = sst [smem:[#allocation9_spill]] %s3949_s4 }
   0x3   :  { %3963 = sst [smem:[#allocation10_spill]] %s3950_s5 }
   0x4   :  { %3964 = sst [smem:[#allocation11_spill]] %s3951_s6 }
   0x5   :  { %3965 = sst [smem:[#allocation12_spill]] %s3958_s13 }
   0x6   :  { %18 = vsyncpa [#allocation3], 0  ;;  %s3566_s25 = smov 0   ;;  %s3568_s26 = smov 0  }
   0x7   :  { %s3570_s27 = smov 0  }
   0x8 LB: > { %3966 = sst [smem:[#allocation5_spill]] %s3482_s26  ;;  %s33_s29 = sadd.s32 1, %s3482_s26  ;;  %s3486_s27 = sphi %s3570_s27, %s24_s27   ;;  %s3482_s26 = sphi %s3568_s26, %s3984_s26   ;;  %s3478_s25 = sphi %s3566_s25, %s3983_s25  }
   0x9   : > { %3967 = sst [smem:[#allocation6_spill]] %s3486_s27  ;;  %p34_p0 = scmp.ge.s32.totalorder %s33_s29, 2 }
   0xa   : > { %p3045_p1 = scmp.ge.s32.totalorder %s3486_s27, 1  ;;  %p509_p2 = scmp.lt.s32.totalorder %s3486_s27, 3 }
   0xb   : > { %s3986_s29 = smov (%p34_p0, %s33_s29), 0 }
   0xc   : > { %3968 = sst [smem:[#allocation7_spill]] %s3986_s29  ;;  %p510_p3 = pnand %p3045_p1, %p509_p2 }
   0xd   : > { %p602_p4 = scmp.lt.s32.totalorder (!%p510_p3), %s3478_s25, 1  ;;  %s3969_s3 = sld [smem:[#allocation8_spill]] (!%p510_p3) }
   0xe   : > { %513 = sbr.rel (%p510_p3) target bundleno = 4086 (0xff6), region = 72  ;;  %s3970_s4 = sld [smem:[#allocation9_spill]] (!%p510_p3) }
   0xf   : > { %s3971_s5 = sld [smem:[#allocation10_spill]] (!%p510_p3)  ;;  %p3058_p5 = scmp.ne.s32.totalorder (!%p510_p3), %s3478_s25, 0 }
  0x10   : > { %s3972_s6 = sld [smem:[#allocation11_spill]] (!%p510_p3) }
  0x13   : > { %s3585_s30 = scalar_select %p602_p4, %s3478_s25, 1 }
  0x15   : > { %s3111_s20 = sshll.u32 %s3585_s30, 5  ;;  %s633_s28 = scalar_lea.vmem %s3953_s8, %s3585_s30 }
  0x16   : > { %s3603_s14 = scalar_lea.vmem %s3969_s3, %s3111_s20  ;;  %s3608_s26 = scalar_lea.vmem %s3970_s4, %s3111_s20 }
  0x17   : > { %s3613_s17 = scalar_lea.vmem %s3971_s5, %s3111_s20  ;;  %s3618_s21 = scalar_lea.vmem %s3972_s6, %s3111_s20 }
  0x18   : > { %s3627_s29 = scalar_lea.vmem %s3954_s9, %s3111_s20  ;;  %s641_s13 = scalar_lea.vmem %s3955_s10, %s3585_s30 }
  0x19   : > { %s3116_s16 = sshll.u32 %s3585_s30, 6  ;;  %s649_s23 = scalar_lea.vmem %s3957_s12, %s3585_s30 }
  0x1a   : > { %s3637_s19 = scalar_lea.vmem %s3956_s11, %s3116_s16  ;;  %654 = sbr.rel (%p3058_p5) target bundleno = 33 (0x21), region = 76 }
  0x1f   : > { %v655_v0 = vld [vmem:[%s3945_s0] sm:$0xff]  ;;  %vm657_vm0 = vcmask 261120   ;;  %v656_v1 = vld [vmem:[%s3945_s0 + $0x8] sm:$0xff] }
  0x20   : > { %658 = vst.msk [vmem:[#allocation2] sm:$0xff] %vm657_vm0, %v655_v0  ;;  %659 = vst.msk [vmem:[#allocation2 + $0x8] sm:$0xff] %vm657_vm0, %v656_v1 }
  0x21 PF: > { %vm664_vm1 = vcmask 261120   ;;  %v711_v16 = vld [vmem:[%s3603_s14 + $0x18] sm:$0xff]  ;;  %v710_v18 = vld [vmem:[%s3603_s14 + $0x10] sm:$0xff]  ;;  %v709_v20 = vld [vmem:[%s3603_s14 + $0x8] sm:$0xff]  ;;  %s3973_s25 = scalar_lea.vmem %s3946_s1, %s3585_s30  ;;  %v3488_v44 = vmov 0.0   ;;  %vm3489_vm2 = vmmov 0   ;;  %v955_v51 = vlaneseq  ;;  %s3977_s16 = scalar_lea.vmem %s3952_s7, %s3585_s30 }
  0x22   : > { %v715_v17 = vld [vmem:[%s3608_s26 + $0x18] sm:$0xff]  ;;  %3195 = vmatprep.subr.mxu0 %v711_v16  ;;  %v714_v19 = vld [vmem:[%s3608_s26 + $0x10] sm:$0xff]  ;;  %v713_v21 = vld [vmem:[%s3608_s26 + $0x8] sm:$0xff]  ;;  %vm960_vm3 = vcmask 64512   ;;  %s3491_s24 = smov 112   ;;  %s3492_s15 = smov 104  }
  0x23   : > { %3206 = vmatprep.subr.mxu1 %v715_v17  ;;  %3196 = vmatpush3.msra.mxu0 %v711_v16  ;;  %v708_v22 = vld [vmem:[%s3603_s14] sm:$0xff]  ;;  %v719_v24 = vld [vmem:[%s3613_s17 + $0x18] sm:$0xff]  ;;  %s3974_s14 = scalar_lea.vmem %s3947_s2, %s3585_s30  ;;  %v718_v41 = vld [vmem:[%s3613_s17 + $0x10] sm:$0xff]  ;;  %v956_v52 = vshrl.u32 %v955_v51, 7  ;;  %v958_v53 = vand.u32 127, %v955_v51  ;;  %s3978_s20 = sld [smem:[#allocation6_spill]] }
  0x24   : > { %3207 = vmatpush3.msra.mxu1 %v715_v17  ;;  %3197 = vmatprep.subr.mxu0 %v710_v18  ;;  %v712_v23 = vld [vmem:[%s3608_s26] sm:$0xff]  ;;  %v717_v42 = vld [vmem:[%s3613_s17 + $0x8] sm:$0xff]  ;;  %vm2764_vm5 = vcmask 523264  }
  0x25   : > { %3208 = vmatprep.subr.mxu1 %v714_v19  ;;  %3198 = vmatpush3.msra.mxu0 %v710_v18  ;;  %v3059_v32 = vld [vmem:[%s3973_s25] ss:$0 sm:$0xff]  ;;  %vm3727_vm4 = vcmp.ge.s32.totalorder %v956_v52, %v958_v53 }
  0x26   : > { %3209 = vmatpush3.msra.mxu1 %v714_v19  ;;  %3199 = vmatprep.subr.mxu0 %v709_v20  ;;  %v3060_v34 = vld [vmem:[%s3974_s14] ss:$0 sm:$0xff] }
  0x27   : > { %v660_v2 = vld [vmem:[#allocation2] sm:$0xff]  ;;  %v661_v3 = vld [vmem:[#allocation2 + $0x8] sm:$0xff]  ;;  %3200 = vmatpush3.msra.mxu0 %v709_v20  ;;  %3210 = vmatprep.subr.mxu1 %v713_v21 }
  0x28   : > { %v665_v4 = vsel %vm664_vm1, %v660_v2, 0.0  ;;  %v668_v5 = vsel %vm664_vm1, %v661_v3, 0.0  ;;  %3201 = vmatprep.subr.mxu0 %v708_v22  ;;  %3211 = vmatpush3.msra.mxu1 %v713_v21  ;;  %v716_v43 = vld [vmem:[%s3613_s17] sm:$0xff]  ;;  %s3490_s17 = smov 120  }
  0x29   : > { %666 = vadd.xlane.f32.xlu0 %v665_v4  ;;  %3202 = vmatpush3.msra.mxu0 %v708_v22  ;;  %v720_v51 = vld [vmem:[%s3618_s21] sm:$0xff]  ;;  %s3979_s25 = sadd.s32 4294967295, %s3978_s20  }
  0x2a   : > { %3212 = vmatprep.subr.mxu1 %v712_v23  ;;  %3217 = vmatprep.subr.mxu0 %v719_v24  ;;  %p3919_p6 = scmp.eq.s32.totalorder %s3979_s25, 1 }
  0x2b   : > { %3213 = vmatpush3.msra.mxu1 %v712_v23 }
  0x2c   : > { %3233 = vmatprep.subr.mxu1 %v3488_v44 }
  0x2d   : > { %669 = vadd.xlane.f32.xlu0 %v668_v5 }
  0xb2   : > { %v667_v6 = vpop.xlane.xlu0 %666 }
  0xb3   : > { %v672_v7 = vmul.f32 0.03125, %v667_v6 }
  0xb5   : > { %v674_v8 = vsub.f32 %v660_v2, %v672_v7 }
  0xb6   : > { %v670_v9 = vpop.xlane.xlu0 %669 }
  0xb7   : > { %v673_v10 = vmul.f32 0.03125, %v670_v9  ;;  %v676_v11 = vmul.f32 %v674_v8, %v674_v8 }
  0xb9   : > { %v675_v12 = vsub.f32 %v661_v3, %v673_v10  ;;  %v678_v13 = vsel %vm664_vm1, %v676_v11, 0.0 }
  0xba   : > { %679 = vadd.xlane.f32.xlu1 %v678_v13 }
  0xbb   : > { %v677_v14 = vmul.f32 %v675_v12, %v675_v12 }
  0xbd   : > { %v681_v15 = vsel %vm664_vm1, %v677_v14, 0.0 }
  0xbe   : > { %682 = vadd.xlane.f32.xlu1 %v681_v15 }
 0x143   : > { %v680_v25 = vpop.xlane.xlu1 %679 }
 0x144   : > { %v684_v26 = vmul.f32 0.03125, %v680_v25 }
 0x146   : > { %v686_v27 = vadd.f32 1e-05, %v684_v26 }
 0x147   : > { %v683_v28 = vpop.xlane.xlu1 %682 }
 0x148   : > { %3396 = vrsqrt.f32 %v686_v27  ;;  %v685_v29 = vmul.f32 0.03125, %v683_v28 }
 0x14a   : > { %v687_v30 = vadd.f32 1e-05, %v685_v29 }
 0x14c   : > { %3398 = vrsqrt.f32 %v687_v30 }
 0x155   : > { %v3397_v31 = vpop.eup %3396 }
 0x156   : > { %v690_v33 = vmul.f32 %v3397_v31, %v674_v8 }
 0x158   : > { %v698_v35 = vmul.f32 %v3059_v32, %v690_v33 }
 0x159   : > { %v3399_v36 = vpop.eup %3398 }
 0x15a   : > { %v3672_v37 = vadd.f32 %v3060_v34, %v698_v35  ;;  %v691_v38 = vmul.f32 %v3399_v36, %v675_v12 }
 0x15c   : > { %3203 = vmatprep.mubr.msk.f32.mxu0 %vm664_vm1, %v3672_v37  ;;  %3214 = vmatprep.mubr.msk.f32.mxu1 %vm664_vm1, %v3672_v37  ;;  %v699_v39 = vmul.f32 %v3059_v32, %v691_v38 }
 0x15e   : > { %v3678_v40 = vadd.f32 %v3060_v34, %v699_v39 }
 0x160   : > { %3204 = vmatmul.mubr.msk.f32.vlgmr.msra.gmra.mxu0 %vm664_vm1, %v3678_v40  ;;  %3215 = vmatmul.mubr.msk.f32.vlgmr.msra.gmra.mxu1 %vm664_vm1, %v3678_v40 }
 0x161   : > { %3218 = vmatpush3.msra.mxu0 %v719_v24  ;;  %3225 = vmatprep.mubr.msk.f32.mxu0 %vm664_vm1, %v3672_v37 }
 0x162   : > { %3219 = vmatprep.subr.mxu0 %v718_v41  ;;  %3235 = vmatprep.mubr.msk.f32.mxu1 %vm3489_vm2, %v3488_v44 }
 0x163   : > { %3220 = vmatpush3.msra.mxu0 %v718_v41 }
 0x164   : > { %3221 = vmatprep.subr.mxu0 %v717_v42 }
 0x165   : > { %3222 = vmatpush3.msra.mxu0 %v717_v42 }
 0x166   : > { %3223 = vmatprep.subr.mxu0 %v716_v43 }
 0x167   : > { %3224 = vmatpush3.msra.mxu0 %v716_v43 }
 0x168   : > { %3226 = vmatmul.mubr.msk.f32.vlgmr.msra.gmra.mxu0 %vm664_vm1, %v3678_v40  ;;  %3228 = vmatprep.subr.mxu0 %v3488_v44 }
 0x169   : > { %3230 = vmatprep.mubr.msk.f32.mxu0 %vm3489_vm2, %v3488_v44 }
 0x220   : > { %v3697_v45 = vpop.f32.mrf.mxu1  ;;  %v3699_v46 = vpop.f32.mrf.mxu0 }
 0x221   : > { %3234 = vmatpush3.xpose.msk.msra.mxu1 %vm960_vm3, %v3697_v45 }
 0x222   : > { %v3703_v47 = vpop.f32.mrf.mxu1  ;;  %3243 = vmatprep.subr.mxu1 %v3488_v44  ;;  %v3711_v48 = vpop.f32.mrf.mxu0 }
 0x223   : > { %3229 = vmatpush3.xpose.msk.msra.mxu0 %vm960_vm3, %v3703_v47 }
 0x224   : > { %3236 = vmatmul.mubr.msk.f32.vlgmr.msra.gmra.mxu1 %vm960_vm3, %v3699_v46  ;;  %3238 = vmatprep.subr.mxu0 %v3488_v44 }
 0x225   : > { %3245 = vmatprep.mubr.msk.f32.mxu1 %vm3489_vm2, %v3488_v44 }
 0x226   : > { %3231 = vmatmul.mubr.msk.f32.vlgmr.msra.gmra.mxu0 %vm960_vm3, %v3711_v48 }
 0x227   : > { %3240 = vmatprep.mubr.msk.f32.mxu0 %vm3489_vm2, %v3488_v44 }
 0x228   : > { %v3719_v49 = vpop.f32.mrf.mxu0 }
 0x229   : > { %3244 = vmatpush3.msra.mxu1 %v3719_v49 }
 0x22a   : > { %v3722_v50 = vpop.f32.mrf.mxu0  ;;  %3253 = vmatprep.subr.mxu1 %v3488_v44 }
 0x22b   : > { %3239 = vmatpush3.msra.mxu0 %v3722_v50 }
 0x22c   : > { %3248 = vmatprep.subr.mxu0 %v3488_v44 }
 0x2e4   : > { %v1109_v55 = vpop.f32.mrf.mxu1 }
 0x2e5   : > { %v1116_v56 = vsel %vm3727_vm4, %v1109_v55, 1e-09 }
 0x2e6   : > { %v1033_v57 = vpop.f32.mrf.mxu0  ;;  %v3237_v58 = vpop.f32.mrf.mxu1  ;;  %v1120_v59 = vsel %vm960_vm3, %v1116_v56, -inf }
 0x2e7   : > { %v1115_v60 = vsel %vm3727_vm4, %v1033_v57, 1e-09  ;;  %1121 = vmax.xlane.f32.xlu1 %v1120_v59 }
 0x2e8   : > { %v3232_v61 = vpop.f32.mrf.mxu0  ;;  %v1117_v62 = vsel %vm960_vm3, %v1115_v60, -inf }
 0x2e9   : > { %1118 = vmax.xlane.f32.xlu0 %v1117_v62 }
 0x370   : > { %v1122_v63 = vpop.xlane.xlu1 %1121 }
 0x371   : > { %v1124_v0 = vsub.f32 %v1116_v56, %v1122_v63  ;;  %v721_v63 = vld [vmem:[%s3618_s21 + $0x8] sm:$0xff] }
 0x372   : > { %v1119_v1 = vpop.xlane.xlu0 %1118 }
 0x373   : > { %v1127_v2 = vmul.f32 1.442695, %v1124_v0  ;;  %v1123_v3 = vsub.f32 %v1115_v60, %v1119_v1 }
 0x375   : > { %3400 = vpow2.f32 %v1127_v2  ;;  %v1125_v4 = vmul.f32 1.442695, %v1123_v3 }
 0x377   : > { %3402 = vpow2.f32 %v1125_v4 }
 0x382   : > { %v3401_v5 = vpop.eup %3400 }
 0x383   : > { %v1132_v6 = vsel %vm960_vm3, %v3401_v5, 0.0 }
 0x384   : > { %v3403_v7 = vpop.eup %3402  ;;  %1133 = vadd.xlane.f32.xlu1 %v1132_v6 }
 0x385   : > { %v1129_v8 = vsel %vm960_vm3, %v3403_v7, 0.0 }
 0x386   : > { %1130 = vadd.xlane.f32.xlu0 %v1129_v8 }
 0x395   : > { %1365 = vrot.lane.b32.xlu1 %v3697_v45, %s3490_s17 }
 0x399   : > { %1285 = vrot.lane.b32.xlu1 %v3711_v48, %s3490_s17 }
 0x39c   : > { %1287 = vrot.lane.b32.xlu0 %v3703_v47, %s3490_s17 }
 0x39d   : > { %1363 = vrot.lane.b32.xlu1 %v3699_v46, %s3490_s17 }
 0x40d   : > { %v1134_v9 = vpop.xlane.xlu1 %1133 }
 0x40e   : > { %3404 = vrcp.f32 %v1134_v9 }
 0x40f   : > { %v1131_v10 = vpop.xlane.xlu0 %1130 }
 0x410   : > { %3406 = vrcp.f32 %v1131_v10 }
 0x411   : > { %v1366_v11 = vpop.permute.xlu1 %1365 }
 0x413   : > { %v1288_v17 = vpop.permute.xlu0 %1287 }
 0x415   : > { %v1286_v13 = vpop.permute.xlu1 %1285 }
 0x419   : > { %v1364_v18 = vpop.permute.xlu1 %1363 }
 0x41b   : > { %v3405_v12 = vpop.eup %3404 }
 0x41c   : > { %v1138_v14 = vmul.f32 %v3405_v12, %v3401_v5 }
 0x41d   : > { %v3407_v15 = vpop.eup %3406 }
 0x41e   : > { %3246 = vmatmul.mubr.msk.f32.vlgmr.msra.gmra.mxu1 %vm960_vm3, %v1138_v14  ;;  %v1137_v16 = vmul.f32 %v3407_v15, %v3403_v7 }
 0x41f   : > { %3254 = vmatpush3.xpose.msk.msra.mxu1 %vm960_vm3, %v1366_v11  ;;  %3255 = vmatprep.mubr.msk.f32.mxu1 %vm3489_vm2, %v3488_v44 }
 0x420   : > { %3241 = vmatmul.mubr.msk.f32.vlgmr.msra.gmra.mxu0 %vm960_vm3, %v1137_v16  ;;  %3263 = vmatprep.subr.mxu1 %v3488_v44 }
 0x421   : > { %3249 = vmatpush3.xpose.msk.msra.mxu0 %vm960_vm3, %v1288_v17  ;;  %3250 = vmatprep.mubr.msk.f32.mxu0 %vm3489_vm2, %v3488_v44 }
 0x422   : > { %3256 = vmatmul.mubr.msk.f32.vlgmr.msra.gmra.mxu1 %vm960_vm3, %v1364_v18  ;;  %3258 = vmatprep.subr.mxu0 %v3488_v44 }
 0x423   : > { %3265 = vmatprep.mubr.msk.f32.mxu1 %vm3489_vm2, %v3488_v44 }
 0x424   : > { %3251 = vmatmul.mubr.msk.f32.vlgmr.msra.gmra.mxu0 %vm960_vm3, %v1286_v13 }
 0x425   : > { %3260 = vmatprep.mubr.msk.f32.mxu0 %vm3489_vm2, %v3488_v44 }
 0x4de   : > { %v1281_v19 = vpop.f32.mrf.mxu1 }
 0x4e0   : > { %v1208_v20 = vpop.f32.mrf.mxu0  ;;  %v3247_v21 = vpop.f32.mrf.mxu1 }
 0x4e2   : > { %v3242_v22 = vpop.f32.mrf.mxu0  ;;  %v1437_v23 = vpop.f32.mrf.mxu1 }
 0x4e3   : > { %v1442_v24 = vsel %vm3727_vm4, %v1437_v23, 1e-09 }
 0x4e4   : > { %v1359_v25 = vpop.f32.mrf.mxu0  ;;  %v3257_v26 = vpop.f32.mrf.mxu1  ;;  %v1446_v27 = vsel %vm960_vm3, %v1442_v24, -inf }
 0x4e5   : > { %v1441_v28 = vsel %vm3727_vm4, %v1359_v25, 1e-09  ;;  %1447 = vmax.xlane.f32.xlu1 %v1446_v27 }
 0x4e6   : > { %v3252_v29 = vpop.f32.mrf.mxu0  ;;  %v1443_v30 = vsel %vm960_vm3, %v1441_v28, -inf }
 0x4e7   : > { %1444 = vmax.xlane.f32.xlu0 %v1443_v30 }
 0x4f6   : > { %1543 = vrot.lane.b32.xlu1 %v3719_v49, %s3490_s17 }
 0x4fa   : > { %1783 = vrot.lane.b32.xlu1 %v3703_v47, %s3491_s24 }
 0x4fe   : > { %1861 = vrot.lane.b32.xlu1 %v3697_v45, %s3491_s24 }
 0x502   : > { %1859 = vrot.lane.b32.xlu1 %v3699_v46, %s3491_s24 }
 0x56e   : > { %v1448_v31 = vpop.xlane.xlu1 %1447 }
 0x56f   : > { %v1450_v32 = vsub.f32 %v1442_v24, %v1448_v31 }
 0x570   : > { %v1445_v33 = vpop.xlane.xlu0 %1444 }
 0x571   : > { %v1453_v34 = vmul.f32 1.442695, %v1450_v32  ;;  %v1449_v35 = vsub.f32 %v1441_v28, %v1445_v33 }
 0x572   : > { %v1544_v36 = vpop.permute.xlu1 %1543 }
 0x573   : > { %3408 = vpow2.f32 %v1453_v34  ;;  %v1451_v38 = vmul.f32 1.442695, %v1449_v35  ;;  %3264 = vmatpush3.msra.mxu1 %v1544_v36  ;;  %v722_v36 = vld [vmem:[%s3618_s21 + $0x10] sm:$0xff] }
 0x574   : > { %3273 = vmatprep.subr.mxu1 %v720_v51 }
 0x575   : > { %3410 = vpow2.f32 %v1451_v38 }
 0x576   : > { %v1784_v56 = vpop.permute.xlu1 %1783 }
 0x57a   : > { %v1862_v60 = vpop.permute.xlu1 %1861 }
 0x57e   : > { %v1860_v62 = vpop.permute.xlu1 %1859 }
 0x580   : > { %v3409_v39 = vpop.eup %3408 }
 0x581   : > { %v1458_v41 = vsel %vm960_vm3, %v3409_v39, 0.0 }
 0x582   : > { %v3411_v42 = vpop.eup %3410  ;;  %1459 = vadd.xlane.f32.xlu0 %v1458_v41 }
 0x583   : > { %v1455_v43 = vsel %vm960_vm3, %v3411_v42, 0.0 }
 0x586   : > { %1456 = vadd.xlane.f32.xlu0 %v1455_v43 }
 0x59c   : > { %1466 = vrot.lane.b32.xlu0 %v3722_v50, %s3490_s17 }
 0x5a0   : > { %1781 = vrot.lane.b32.xlu0 %v3711_v48, %s3491_s24 }
 0x60b   : > { %v1460_v52 = vpop.xlane.xlu0 %1459 }
 0x60c   : > { %3412 = vrcp.f32 %v1460_v52 }
 0x60f   : > { %v1457_v53 = vpop.xlane.xlu0 %1456 }
 0x610   : > { %3414 = vrcp.f32 %v1457_v53 }
 0x613   : > { %v1467_v55 = vpop.permute.xlu0 %1466 }
 0x614   : > { %3259 = vmatpush3.msra.mxu0 %v1467_v55 }
 0x615   : > { %3268 = vmatprep.subr.mxu0 %v721_v63 }
 0x617   : > { %v1782_v7 = vpop.permute.xlu0 %1781 }
 0x619   : > { %v3413_v57 = vpop.eup %3412 }
 0x61a   : > { %v1464_v58 = vmul.f32 %v3413_v57, %v3409_v39 }
 0x61c   : > { %3266 = vmatmul.mubr.msk.f32.vlgmr.msra.gmra.mxu1 %vm960_vm3, %v1464_v58 }
 0x61d   : > { %v3415_v59 = vpop.eup %3414  ;;  %3275 = vmatprep.mubr.msk.f32.mxu1 %vm960_vm3, %v1208_v20  ;;  %3274 = vmatpush3.msra.mxu1 %v720_v51 }
 0x61e   : > { %3283 = vmatprep.subr.mxu1 %v3488_v44  ;;  %v1463_v61 = vmul.f32 %v3415_v59, %v3411_v42 }
 0x620   : > { %3261 = vmatmul.mubr.msk.f32.vlgmr.msra.gmra.mxu0 %vm960_vm3, %v1463_v61  ;;  %3276 = vmatmul.mubr.msk.f32.vlgmr.msra.gmra.mxu1 %vm960_vm3, %v1281_v19 }
 0x621   : > { %3284 = vmatpush3.xpose.msk.msra.mxu1 %vm960_vm3, %v1862_v60  ;;  %3285 = vmatprep.mubr.msk.f32.mxu1 %vm3489_vm2, %v3488_v44 }
 0x622   : > { %3293 = vmatprep.subr.mxu1 %v3488_v44  ;;  %3269 = vmatpush3.msra.mxu0 %v721_v63 }
 0x623   : > { %3278 = vmatprep.subr.mxu0 %v3488_v44 }
 0x624   : > { %3286 = vmatmul.mubr.msk.f32.vlgmr.msra.gmra.mxu1 %vm960_vm3, %v1860_v62 }
 0x625   : > { %3295 = vmatprep.mubr.msk.f32.mxu1 %vm3489_vm2, %v3488_v44 }
 0x6dc   : > { %v1615_v0 = vpop.f32.mrf.mxu1 }
 0x6de   : > { %v3267_v1 = vpop.f32.mrf.mxu1 }
 0x6e0   : > { %v1538_v2 = vpop.f32.mrf.mxu0  ;;  %v3798_v3 = vpop.f32.mrf.mxu1 }
 0x6e1   : > { %3270 = vmatprep.mubr.msk.f32.mxu0 %vm960_vm3, %v1538_v2 }
 0x6e2   : > { %v3262_v4 = vpop.f32.mrf.mxu0  ;;  %3271 = vmatmul.mubr.msk.f32.vlgmr.msra.gmra.mxu0 %vm960_vm3, %v1615_v0  ;;  %v3802_v5 = vpop.f32.mrf.mxu1 }
 0x6e3   : > { %3279 = vmatpush3.xpose.msk.msra.mxu0 %vm960_vm3, %v1784_v56  ;;  %3280 = vmatprep.mubr.msk.f32.mxu0 %vm3489_vm2, %v3488_v44 }
 0x6e4   : > { %v1933_v6 = vpop.f32.mrf.mxu1  ;;  %3288 = vmatprep.subr.mxu0 %v3488_v44 }
 0x6e5   : > { %v1938_v8 = vsel %vm3727_vm4, %v1933_v6, 1e-09 }
 0x6e6   : > { %3281 = vmatmul.mubr.msk.f32.vlgmr.msra.gmra.mxu0 %vm960_vm3, %v1782_v7  ;;  %v3287_v9 = vpop.f32.mrf.mxu1  ;;  %v1942_v10 = vsel %vm960_vm3, %v1938_v8, -inf }
 0x6e7   : > { %1943 = vmax.xlane.f32.xlu1 %v1942_v10  ;;  %3290 = vmatprep.mubr.msk.f32.mxu0 %vm3489_vm2, %v3488_v44 }
 0x6f8   : > { %2037 = vrot.lane.b32.xlu1 %v3719_v49, %s3491_s24 }
 0x6fc   : > { %2198 = vrot.lane.b32.xlu1 %v3703_v47, %s3492_s15 }
 0x700   : > { %2276 = vrot.lane.b32.xlu1 %v3697_v45, %s3492_s15 }
 0x704   : > { %2274 = vrot.lane.b32.xlu1 %v3699_v46, %s3492_s15 }
 0x770   : > { %v1944_v11 = vpop.xlane.xlu1 %1943 }
 0x771   : > { %v1946_v13 = vsub.f32 %v1938_v8, %v1944_v11 }
 0x773   : > { %v1949_v14 = vmul.f32 1.442695, %v1946_v13 }
 0x774   : > { %v2038_v12 = vpop.permute.xlu1 %2037 }
 0x775   : > { %3294 = vmatpush3.msra.mxu1 %v2038_v12  ;;  %3416 = vpow2.f32 %v1949_v14 }
 0x776   : > { %3303 = vmatprep.subr.mxu1 %v3488_v44 }
 0x778   : > { %v2199_v28 = vpop.permute.xlu1 %2198 }
 0x77c   : > { %v2277_v42 = vpop.permute.xlu1 %2276 }
 0x780   : > { %v2275_v52 = vpop.permute.xlu1 %2274 }
 0x782   : > { %v3417_v46 = vpop.eup %3416 }
 0x783   : > { %v1954_v19 = vsel %vm960_vm3, %v3417_v46, 0.0 }
 0x7a2   : > { %v3823_v15 = vpop.f32.mrf.mxu0 }
 0x7a3   : > { %v1778_v59 = vadd.f32 %v3798_v3, %v3823_v15  ;;  %v723_v15 = vld [vmem:[%s3618_s21 + $0x18] sm:$0xff] }
 0x7a4   : > { %v3825_v16 = vpop.f32.mrf.mxu0 }
 0x7a5   : > { %v1773_v61 = vadd.f32 %v3802_v5, %v3825_v16 }
 0x7a6   : > { %v1855_v17 = vpop.f32.mrf.mxu0 }
 0x7a7   : > { %v1937_v47 = vsel %vm3727_vm4, %v1855_v17, 1e-09 }
 0x7a8   : > { %v3282_v45 = vpop.f32.mrf.mxu0  ;;  %v1939_v18 = vsel %vm960_vm3, %v1937_v47, -inf }
 0x7a9   : > { %1940 = vmax.xlane.f32.xlu0 %v1939_v18 }
 0x7ad   : > { %1955 = vadd.xlane.f32.xlu0 %v1954_v19 }
 0x832   : > { %v1941_v20 = vpop.xlane.xlu0 %1940 }
 0x833   : > { %v1945_v21 = vsub.f32 %v1937_v47, %v1941_v20 }
 0x835   : > { %v1947_v22 = vmul.f32 1.442695, %v1945_v21 }
 0x836   : > { %v1956_v23 = vpop.xlane.xlu0 %1955 }
 0x837   : > { %3418 = vpow2.f32 %v1947_v22 }
 0x838   : > { %3420 = vrcp.f32 %v1956_v23 }
 0x844   : > { %v3419_v24 = vpop.eup %3418 }
 0x845   : > { %v3421_v25 = vpop.eup %3420  ;;  %v1951_v26 = vsel %vm960_vm3, %v3419_v24, 0.0 }
 0x846   : > { %1952 = vadd.xlane.f32.xlu0 %v1951_v26  ;;  %v1960_v27 = vmul.f32 %v3421_v25, %v3417_v46 }
 0x848   : > { %3296 = vmatmul.mubr.msk.f32.vlgmr.msra.gmra.mxu1 %vm960_vm3, %v1960_v27 }
 0x849   : > { %3304 = vmatpush3.xpose.msk.msra.mxu1 %vm960_vm3, %v2199_v28  ;;  %3305 = vmatprep.mubr.msk.f32.mxu1 %vm3489_vm2, %v3488_v44 }
 0x84a   : > { %3313 = vmatprep.subr.mxu1 %v3488_v44 }
 0x85c   : > { %1961 = vrot.lane.b32.xlu0 %v3722_v50, %s3491_s24 }
 0x860   : > { %2196 = vrot.lane.b32.xlu0 %v3711_v48, %s3492_s15 }
 0x8cf   : > { %v1953_v29 = vpop.xlane.xlu0 %1952 }
 0x8d0   : > { %3422 = vrcp.f32 %v1953_v29 }
 0x8d3   : > { %v1962_v30 = vpop.permute.xlu0 %1961 }
 0x8d4   : > { %3289 = vmatpush3.msra.mxu0 %v1962_v30 }
 0x8d5   : > { %3298 = vmatprep.subr.mxu0 %v722_v36 }
 0x8d7   : > { %v2197_v31 = vpop.permute.xlu0 %2196 }
 0x8d8   : > { %3306 = vmatmul.mubr.msk.f32.vlgmr.msra.gmra.mxu1 %vm960_vm3, %v2197_v31 }
 0x8d9   : > { %3315 = vmatprep.mubr.msk.f32.mxu1 %vm3489_vm2, %v3488_v44 }
 0x8dd   : > { %v3423_v32 = vpop.eup %3422 }
 0x8de   : > { %v1959_v33 = vmul.f32 %v3423_v32, %v3419_v24  ;;  %v2660_v32 = vld [vmem:[%s3627_s29 + $0x18] sm:$0xff] }
 0x8e0   : > { %3291 = vmatmul.mubr.msk.f32.vlgmr.msra.gmra.mxu0 %vm960_vm3, %v1959_v33  ;;  %v2659_v33 = vld [vmem:[%s3627_s29 + $0x10] sm:$0xff] }
 0x8e1   : > { %3299 = vmatpush3.msra.mxu0 %v722_v36  ;;  %v2756_v36 = vld [vmem:[%s3637_s19 + $0x38] sm:$0xff] }
 0x8e2   : > { %3308 = vmatprep.subr.mxu0 %v3488_v44 }
 0x908   : > { %v2109_v34 = vpop.f32.mrf.mxu1 }
 0x90a   : > { %v3297_v35 = vpop.f32.mrf.mxu1 }
 0x90b   : > { %v2657_v35 = vld [vmem:[%s3627_s29] sm:$0xff] }
 0x998   : > { %v2270_v48 = vpop.f32.mrf.mxu1 }
 0x999   : > { %v2352_v38 = vsel %vm3727_vm4, %v2270_v48, 1e-09  ;;  %v2755_v48 = vld [vmem:[%s3637_s19 + $0x30] sm:$0xff] }
 0x99a   : > { %v3307_v39 = vpop.f32.mrf.mxu1  ;;  %v2354_v41 = vsel %vm960_vm3, %v2352_v38, -inf }
 0x99b   : > { %2355 = vmax.xlane.f32.xlu0 %v2354_v41  ;;  %v2753_v39 = vld [vmem:[%s3637_s19 + $0x20] sm:$0xff]  ;;  %v2752_v41 = vld [vmem:[%s3637_s19 + $0x18] sm:$0xff] }
 0x9a0   : > { %v2033_v43 = vpop.f32.mrf.mxu0 }
 0x9a1   : > { %3300 = vmatprep.mubr.msk.f32.mxu0 %vm960_vm3, %v2033_v43 }
 0x9a2   : > { %v3292_v51 = vpop.f32.mrf.mxu0  ;;  %3301 = vmatmul.mubr.msk.f32.vlgmr.msra.gmra.mxu0 %vm960_vm3, %v2109_v34  ;;  %v2658_v34 = vld [vmem:[%s3627_s29 + $0x8] sm:$0xff] }
 0x9a3   : > { %3309 = vmatpush3.xpose.msk.msra.mxu0 %vm960_vm3, %v2277_v42  ;;  %3310 = vmatprep.mubr.msk.f32.mxu0 %vm3489_vm2, %v3488_v44 }
 0x9a4   : > { %3318 = vmatprep.subr.mxu0 %v3488_v44 }
 0x9a6   : > { %3311 = vmatmul.mubr.msk.f32.vlgmr.msra.gmra.mxu0 %vm960_vm3, %v2275_v52 }
 0x9a7   : > { %3320 = vmatprep.mubr.msk.f32.mxu0 %vm3489_vm2, %v3488_v44 }
 0xa24   : > { %v2356_v53 = vpop.xlane.xlu0 %2355 }
 0xa25   : > { %v2360_v55 = vsub.f32 %v2352_v38, %v2356_v53  ;;  %v2754_v38 = vld [vmem:[%s3637_s19 + $0x28] sm:$0xff] }
 0xa27   : > { %v2362_v56 = vmul.f32 1.442695, %v2360_v55 }
 0xa29   : > { %3424 = vpow2.f32 %v2362_v56 }
 0xa36   : > { %v3425_v57 = vpop.eup %3424 }
 0xa37   : > { %v2366_v58 = vsel %vm960_vm3, %v3425_v57, 0.0 }
 0xa38   : > { %2367 = vadd.xlane.f32.xlu0 %v2366_v58 }
 0xa62   : > { %v3302_v60 = vpop.f32.mrf.mxu0 }
 0xa63   : > { %v2195_v62 = vadd.f32 %v3302_v60, %v1778_v59 }
 0xa64   : > { %v2185_v63 = vpop.f32.mrf.mxu0 }
 0xa65   : > { %v2194_v0 = vadd.f32 %v2185_v63, %v1773_v61 }
 0xa66   : > { %v2348_v1 = vpop.f32.mrf.mxu0 }
 0xa67   : > { %v2353_v44 = vsel %vm3727_vm4, %v2348_v1, 1e-09 }
 0xa68   : > { %v3312_v2 = vpop.f32.mrf.mxu0  ;;  %v2357_v4 = vsel %vm960_vm3, %v2353_v44, -inf }
 0xa69   : > { %2358 = vmax.xlane.f32.xlu1 %v2357_v4  ;;  %v2750_v2 = vld [vmem:[%s3637_s19 + $0x8] sm:$0xff]  ;;  %v2749_v4 = vld [vmem:[%s3637_s19] sm:$0xff] }
 0xa7a   : > { %2452 = vrot.lane.b32.xlu1 %v3719_v49, %s3492_s15 }
 0xac1   : > { %v2368_v54 = vpop.xlane.xlu0 %2367 }
 0xaf2   : > { %v2359_v6 = vpop.xlane.xlu1 %2358 }
 0xaf3   : > { %v2361_v3 = vsub.f32 %v2353_v44, %v2359_v6  ;;  %v2751_v44 = vld [vmem:[%s3637_s19 + $0x10] sm:$0xff]  ;;  %s3493_s19 = smov [#allocation2]  }
 0xaf4   : > { %s2859_s6 = sshll.u32 %s3493_s19, 4  ;;  %s2860_s6 = int_to_ptr.vmem [resolvable:$true] %s2859_s6 }
 0xaf5   : > { %v2364_v7 = vmul.f32 1.442695, %v2361_v3  ;;  %v3101_v3 = vld [vmem:[%s641_s13] ss:$0 sm:$0xff]  ;;  %s3436_s30 = scalar_lea.vmem %s2860_s6, 256  ;;  %p3443_p10 = scmp.lt.s32.totalorder %s2860_s6, %s2860_s6 }
 0xaf6   : > { %v2453_v8 = vpop.permute.xlu1 %2452  ;;  %p3437_p7 = scmp.ne.s32.totalorder %s2860_s6, %s3436_s30  ;;  %p3444_p11 = scmp.lt.s32.totalorder %s3436_s30, %s3436_s30 }
 0xaf7   : > { %3426 = vpow2.f32 %v2364_v7  ;;  %3319 = vmatpush3.msra.mxu0 %v2453_v8 }
 0xaf8   : > { %3428 = vrcp.f32 %v2368_v54  ;;  %3328 = vmatprep.subr.mxu0 %v2660_v32  ;;  %p3438_p8 = pnand %p3437_p7, %p3919_p6  ;;  %p3445_p12 = por %p3444_p11, %p3443_p10 }
 0xafa   : > { %p3439_p9 = pneg %p3438_p8 }
 0xafc   : > { %p3446_p13 = pnand %p3445_p12, %p3439_p9 }
 0xb04   : > { %v3427_v5 = vpop.eup %3426 }
 0xb05   : > { %v2369_v9 = vsel %vm960_vm3, %v3427_v5, 0.0  ;;  %v3429_v11 = vpop.eup %3428 }
 0xb06   : > { %2370 = vadd.xlane.f32.xlu0 %v2369_v9  ;;  %v2374_v12 = vmul.f32 %v3429_v11, %v3425_v57  ;;  %v3099_v57 = vld [vmem:[%s3977_s16] ss:$0 sm:$0xff] }
 0xb07   : > { %v3104_v9 = vld [vmem:[%s649_s23] ss:$0 sm:$0xff] }
 0xb1c   : > { %2376 = vrot.lane.b32.xlu0 %v3722_v50, %s3492_s15 }
 0xb8f   : > { %v2371_v10 = vpop.xlane.xlu0 %2370 }
 0xb90   : > { %3430 = vrcp.f32 %v2371_v10 }
 0xb93   : > { %v2377_v49 = vpop.permute.xlu0 %2376 }
 0xb94   : > { %3314 = vmatpush3.msra.mxu1 %v2377_v49 }
 0xb95   : > { %3316 = vmatmul.mubr.msk.f32.vlgmr.msra.gmra.mxu1 %vm960_vm3, %v2374_v12  ;;  %3323 = vmatprep.subr.mxu1 %v723_v15 }
 0xb96   : > { %3324 = vmatpush3.msra.mxu1 %v723_v15 }
 0xb97   : > { %3339 = vmatprep.subr.mxu1 %v2756_v36 }
 0xb9d   : > { %v3431_v13 = vpop.eup %3430 }
 0xb9e   : > { %v2375_v14 = vmul.f32 %v3431_v13, %v3427_v5 }
 0xba0   : > { %3321 = vmatmul.mubr.msk.f32.vlgmr.msra.gmra.mxu0 %vm960_vm3, %v2375_v14 }
 0xba1   : > { %3329 = vmatpush3.msra.mxu0 %v2660_v32 }
 0xba2   : > { %3330 = vmatprep.subr.mxu0 %v2659_v33 }
 0xba3   : > { %3331 = vmatpush3.msra.mxu0 %v2659_v33 }
 0xba4   : > { %3332 = vmatprep.subr.mxu0 %v2658_v34 }
 0xba5   : > { %3333 = vmatpush3.msra.mxu0 %v2658_v34 }
 0xba6   : > { %3334 = vmatprep.subr.mxu0 %v2657_v35 }
 0xba7   : > { %3335 = vmatpush3.msra.mxu0 %v2657_v35 }
 0xc55   : > { %v2448_v16 = vpop.f32.mrf.mxu1 }
 0xc56   : > { %3325 = vmatprep.mubr.msk.f32.mxu1 %vm960_vm3, %v2448_v16 }
 0xc57   : > { %v3317_v50 = vpop.f32.mrf.mxu1 }
 0xc60   : > { %v2524_v17 = vpop.f32.mrf.mxu0 }
 0xc61   : > { %3326 = vmatmul.mubr.msk.f32.vlgmr.msra.gmra.mxu1 %vm960_vm3, %v2524_v17 }
 0xc62   : > { %v3322_v47 = vpop.f32.mrf.mxu0  ;;  %3340 = vmatpush3.msra.mxu1 %v2756_v36 }
 0xc63   : > { %3341 = vmatprep.subr.mxu1 %v2755_v48 }
 0xc64   : > { %3342 = vmatpush3.msra.mxu1 %v2755_v48 }
 0xc65   : > { %3343 = vmatprep.subr.mxu1 %v2754_v38 }
 0xc66   : > { %3344 = vmatpush3.msra.mxu1 %v2754_v38 }
 0xc67   : > { %3345 = vmatprep.subr.mxu1 %v2753_v39 }
 0xc68   : > { %3346 = vmatpush3.msra.mxu1 %v2753_v39 }
 0xc69   : > { %3347 = vmatprep.subr.mxu1 %v2752_v41 }
 0xc6a   : > { %3348 = vmatpush3.msra.mxu1 %v2752_v41 }
 0xc6b   : > { %3349 = vmatprep.subr.mxu1 %v2751_v44 }
 0xc6c   : > { %3350 = vmatpush3.msra.mxu1 %v2751_v44 }
 0xc6d   : > { %3351 = vmatprep.subr.mxu1 %v2750_v2 }
 0xc6e   : > { %3352 = vmatpush3.msra.mxu1 %v2750_v2 }
 0xc6f   : > { %3353 = vmatprep.subr.mxu1 %v2749_v4 }
 0xc70   : > { %3354 = vmatpush3.msra.mxu1 %v2749_v4 }
 0xd21   : > { %v3327_v45 = vpop.f32.mrf.mxu1 }
 0xd22   : > { %v2610_v18 = vadd.f32 %v3327_v45, %v2195_v62  ;;  %v3100_v62 = vld [vmem:[%s633_s28] ss:$0 sm:$0xff] }
 0xd23   : > { %v2600_v46 = vpop.f32.mrf.mxu1 }
 0xd24   : > { %v2609_v19 = vadd.f32 %v2600_v46, %v2194_v0  ;;  %v2612_v20 = vadd.f32 %v2610_v18, %v3678_v40 }
 0xd26   : > { %v2618_v21 = vsel %vm664_vm1, %v2612_v20, 0.0  ;;  %v2611_v22 = vadd.f32 %v2609_v19, %v3672_v37 }
 0xd27   : > { %2619 = vadd.xlane.f32.xlu0 %v2618_v21 }
 0xd28   : > { %v2615_v23 = vsel %vm664_vm1, %v2611_v22, 0.0 }
 0xd29   : > { %2616 = vadd.xlane.f32.xlu1 %v2615_v23 }
 0xdb0   : > { %v2620_v24 = vpop.xlane.xlu0 %2619 }
 0xdb1   : > { %v2622_v25 = vmul.f32 0.03125, %v2620_v24 }
 0xdb2   : > { %v2617_v26 = vpop.xlane.xlu1 %2616 }
 0xdb3   : > { %v2624_v27 = vsub.f32 %v2612_v20, %v2622_v25  ;;  %v2621_v28 = vmul.f32 0.03125, %v2617_v26 }
 0xdb5   : > { %v2623_v29 = vsub.f32 %v2611_v22, %v2621_v28  ;;  %v2626_v30 = vmul.f32 %v2624_v27, %v2624_v27 }
 0xdb7   : > { %v2630_v40 = vsel %vm664_vm1, %v2626_v30, 0.0  ;;  %v2625_v31 = vmul.f32 %v2623_v29, %v2623_v29 }
 0xdb8   : > { %2631 = vadd.xlane.f32.xlu1 %v2630_v40 }
 0xdb9   : > { %v2627_v37 = vsel %vm664_vm1, %v2625_v31, 0.0 }
 0xdba   : > { %2628 = vadd.xlane.f32.xlu0 %v2627_v37 }
 0xe41   : > { %v2632_v42 = vpop.xlane.xlu1 %2631 }
 0xe42   : > { %v2634_v43 = vmul.f32 0.03125, %v2632_v42 }
 0xe43   : > { %v2629_v51 = vpop.xlane.xlu0 %2628 }
 0xe44   : > { %v2636_v52 = vadd.f32 1e-05, %v2634_v43  ;;  %v2633_v53 = vmul.f32 0.03125, %v2629_v51 }
 0xe46   : > { %3432 = vrsqrt.f32 %v2636_v52  ;;  %v2635_v55 = vadd.f32 1e-05, %v2633_v53 }
 0xe48   : > { %3434 = vrsqrt.f32 %v2635_v55 }
 0xe53   : > { %v3433_v56 = vpop.eup %3432 }
 0xe54   : > { %v2640_v58 = vmul.f32 %v3433_v56, %v2624_v27 }
 0xe55   : > { %v3435_v59 = vpop.eup %3434 }
 0xe56   : > { %v2639_v60 = vmul.f32 %v3435_v59, %v2623_v29  ;;  %v2648_v61 = vmul.f32 %v3099_v57, %v2640_v58 }
 0xe58   : > { %v2647_v63 = vmul.f32 %v3099_v57, %v2639_v60  ;;  %v2656_v1 = vadd.f32 %v3100_v62, %v2648_v61 }
 0xe5a   : > { %v2655_v0 = vadd.f32 %v3100_v62, %v2647_v63 }
 0xe5c   : > { %3336 = vmatprep.mubr.msk.f32.mxu0 %vm664_vm1, %v2655_v0 }
 0xe5d   : > { %3337 = vmatmul.mubr.msk.f32.vlgmr.msra.gmra.mxu0 %vm664_vm1, %v2656_v1 }
 0xf1d   : > { %v3338_v6 = vpop.f32.mrf.mxu0 }
 0xf1e   : > { %v2746_v5 = vadd.f32 %v3338_v6, %v3101_v3 }
 0xf1f   : > { %v2740_v7 = vpop.f32.mrf.mxu0 }
 0xf20   : > { %v2741_v8 = vadd.f32 %v3101_v3, %v2740_v7 }
 0xf22   : > { %3355 = vmatprep.mubr.msk.f32.mxu1 %vm2764_vm5, %v2741_v8 }
 0xf23   : > { %3356 = vmatmul.mubr.msk.f32.vlgmr.msra.gmra.mxu1 %vm2764_vm5, %v2746_v5 }
 0xfe3   : > { %v3357_v54 = vpop.f32.mrf.mxu1 }
 0xfe4   : > { %v2843_v10 = vadd.f32 %v3357_v54, %v3104_v9 }
 0xfe5   : > { %v2837_v11 = vpop.f32.mrf.mxu1 }
 0xfe6   : > { %v2847_v49 = vadd.f32 %v2843_v10, %v2656_v1  ;;  %v2838_v12 = vadd.f32 %v3104_v9, %v2837_v11 }
 0xfe8   : > { %2849 = vst.msk [vmem:[#allocation2 + $0x8] sm:$0xff] %vm664_vm1, %v2847_v49  ;;  %v2846_v13 = vadd.f32 %v2838_v12, %v2655_v0 }
 0xfea   : > { %2848 = vst.msk [vmem:[#allocation2] sm:$0xff] %vm664_vm1, %v2846_v13 }
 0xfeb   : > { %3449 = shalt.err (!%p3446_p13)
}
 0xfec   : > { %s3494_s23 = smov 128   ;;  %s3495_s26 = smov 8  }
 0xfed   : > { %s3981_s17 = sld [smem:[#allocation12_spill]] }
 0xff3   : > { %3359 = dma.vmem_to_hbm [thread:$0]  (%p3919_p6), %s2860_s6, 256, %s3981_s17, [#allocation3], %s3494_s23, %s3494_s23, %s3495_s26  }
 0xff4   : > { %3473 = dma.done.wait (%p3919_p6), [#allocation3], 256  }
 0xff5   : > { %3475 = vsyncadd (%p3919_p6), [#allocation3], 4294967040 }
 0xff6 PF: > { %s3982_s24 = sld [smem:[#allocation6_spill]] }
 0xff7   : > { %s3983_s25 = sld [smem:[#allocation5_spill]] }
 0xff8   : > { %s3984_s26 = sld [smem:[#allocation7_spill]] }
 0xffc   : > { %s24_s27 = sadd.s32 1, %s3982_s24  }
 0xffd   : > { %p21_p0 = scmp.ge.s32.totalorder %s24_s27, 4  }
 0xfff   :  { %23 = sbr.rel (!%p21_p0) target bundleno = 8 (0x8), region = 140 }
0x1004   :  { %2875 = vsyncpa [#allocation3], 1 }
0x1005   :  { %2877 = vsyncpa [#allocation3 + $0x1], 1 }

</bundles_post_ra>
